<compile_context>
chip_gen: v6e
topology: v6e:2x2x1
jax: 0.10.0
libtpu: 0.0.40
codegen_flags: <defaults>
</compile_context>

<pallas_src>
import functools

import jax
import jax.numpy as jnp
import numpy as np
from jax import lax
from jax.experimental import pallas as pl
from jax.experimental.pallas import tpu as pltpu


# ----------------------------------------------------------------------------
# Helpers
# ----------------------------------------------------------------------------
def _round_up(x, m):
    return (x + m - 1) // m * m


def _largest_divisor_leq(n, target):
    """Largest divisor of n that is <= target (time padding is NOT allowed:
    extra zero timesteps would change the final hidden state)."""
    t = min(n, max(1, target))
    while n % t:
        t -= 1
    return t


def _pad_gate_cols(w_t, H, Hp):
    """w_t: (K, 4H) with PyTorch gate order [i|f|g|o] along the last dim.
    Pads each gate block from H to Hp lanes -> (K, 4Hp)."""
    blocks = [w_t[:, g * H:(g + 1) * H] for g in range(4)]
    return jnp.concatenate(
        [jnp.pad(blk, ((0, 0), (0, Hp - H))) for blk in blocks], axis=1)


# ----------------------------------------------------------------------------
# Fused Pallas kernel: all LSTM layers + final Linear, time-chunked grid
# ----------------------------------------------------------------------------
def _fused_lstm_fc_kernel(*refs, Tc, Bt, Hp, num_layers, n_hseq, unroll):
    # refs = [x_chunk, (wih, whh, b) * L, wfc, bfc, out,
    #         xp_sc, hseq_sc * n_hseq, h_sc * L, c_sc * L]
    n_in = 1 + 3 * num_layers + 2
    x_ref = refs[0]
    layer_refs = refs[1:1 + 3 * num_layers]
    wfc_ref = refs[1 + 3 * num_layers]
    bfc_ref = refs[2 + 3 * num_layers]
    out_ref = refs[n_in]
    scratch = refs[n_in + 1:]
    xp_ref = scratch[0]                                   # (Tc*Bt, 4Hp) f32
    hseq_refs = scratch[1:1 + n_hseq]                     # (Tc*Bt, Hp) bf16
    h_refs = scratch[1 + n_hseq:1 + n_hseq + num_layers]  # (Bt, Hp) f32
    c_refs = scratch[1 + n_hseq + num_layers:]            # (Bt, Hp) f32

    chunk = pl.program_id(1)

    # h0 = c0 = 0 at the start of every sequence (new batch tile).
    @pl.when(chunk == 0)
    def _init():
        for r in tuple(h_refs) + tuple(c_refs):
            r[...] = jnp.zeros_like(r)

    layer_in = x_ref[...]                      # (Tc*Bt, in_l) bf16
    h_top = None

    for l in range(num_layers):
        wih_ref = layer_refs[3 * l]
        whh_ref = layer_refs[3 * l + 1]
        b_ref = layer_refs[3 * l + 2]

        # Batched input projection for the whole chunk (bias folded in once).
        # bf16 x bf16 -> f32 accumulation on the MXU.
        xp_ref[...] = (
            jnp.dot(layer_in, wih_ref[...], preferred_element_type=jnp.float32)
            + b_ref[...]
        )

        write_seq = (l + 1 < num_layers)       # lower layers feed the next layer
        wbuf = hseq_refs[l % n_hseq] if write_seq else None

        def step(t, carry, whh_ref=whh_ref, wbuf=wbuf, write_seq=write_seq):
            h, c = carry                       # f32 state
            r0 = pl.multiple_of(t * Bt, Bt)
            gates = xp_ref[pl.ds(r0, Bt), :] + jnp.dot(
                h.astype(jnp.bfloat16), whh_ref[...],
                preferred_element_type=jnp.float32)
            # PyTorch gate order i, f, g, o; each block is a full 128-lane slab.
            i_g = jax.nn.sigmoid(gates[:, 0 * Hp:1 * Hp])
            f_g = jax.nn.sigmoid(gates[:, 1 * Hp:2 * Hp])
            g_g = jnp.tanh(gates[:, 2 * Hp:3 * Hp])
            o_g = jax.nn.sigmoid(gates[:, 3 * Hp:4 * Hp])
            c_new = f_g * c + i_g * g_g
            h_new = o_g * jnp.tanh(c_new)
            if write_seq:
                wbuf[pl.ds(r0, Bt), :] = h_new.astype(jnp.bfloat16)
            return (h_new, c_new)

        h0 = h_refs[l][...]
        c0 = c_refs[l][...]
        h_top, c_last = lax.fori_loop(0, Tc, step, (h0, c0),
                                      unroll=min(Tc, unroll))
        # Persist the per-layer recurrent state for the next time chunk.
        h_refs[l][...] = h_top
        c_refs[l][...] = c_last

        if write_seq:
            layer_in = wbuf[...]               # bf16, stays in VMEM

    # Fused final Linear on the last timestep of the top layer, last chunk only.
    @pl.when(chunk == pl.num_programs(1) - 1)
    def _finalize():
        out_ref[...] = (
            jnp.dot(h_top.astype(jnp.bfloat16), wfc_ref[...],
                    preferred_element_type=jnp.float32)
            + bfc_ref[...]
        )


# ----------------------------------------------------------------------------
# Wrapper
# ----------------------------------------------------------------------------
@functools.partial(jax.jit,
                   static_argnames=("output_size", "time_chunk", "unroll",
                                    "batch_tile"))
def lstm_forecaster_forward(x_bsi, kparams, output_size,
                            time_chunk=64, unroll=8, batch_tile=128):
    """x_bsi: (B, S, I) batch_first, like the PyTorch module.
    For v7x dual-TensorCore use, pick batch_tile <= B/2 (multiple of 16)."""
    B, S, I = x_bsi.shape
    Bt = _round_up(min(max(B, 1), batch_tile), 16)   # bf16 sublane packing
    Bp = _round_up(B, Bt)
    n_btiles = Bp // Bt
    Tc = _largest_divisor_leq(S, time_chunk)
    n_chunks = S // Tc

    wfc_p, bfc_p = kparams["fc"]
    Hp, Op = wfc_p.shape
    num_layers = len(kparams["layers"])
    n_hseq = min(max(num_layers - 1, 0), 2)          # ping-pong inter-layer bufs

    # Layout plumbing: batch_first -> per (batch-tile, chunk) lane-dense slabs
    # of shape (Tc*Bt, I), already in bf16 (halves the input DMA).
    x = jnp.transpose(x_bsi, (1, 0, 2)).astype(jnp.bfloat16)   # (S, B, I)
    x = jnp.pad(x, ((0, 0), (0, Bp - B), (0, 0)))              # (S, Bp, I)
    x = x.reshape(n_chunks, Tc, n_btiles, Bt, I)
    x = jnp.transpose(x, (2, 0, 1, 3, 4))                      # (nb, nc, Tc, Bt, I)
    x_prep = x.reshape(n_btiles, n_chunks, Tc * Bt, I)

    flat = [x_prep]
    for (wih, whh, b) in kparams["layers"]:
        flat += [wih, whh, b]
    flat += [wfc_p, bfc_p]

    # Specs: x is pipelined per (batch tile, time chunk); weights stay whole in
    # VMEM (small); output block is revisited across the chunk axis.
    x_spec = pl.BlockSpec((None, None, Tc * Bt, I), lambda b, c: (b, c, 0, 0))
    w_spec = pl.BlockSpec(memory_space=pltpu.MemorySpace.VMEM)
    in_specs = [x_spec] + [w_spec] * (3 * num_layers + 2)
    out_spec = pl.BlockSpec((Bt, Op), lambda b, c: (b, 0))

    scratch_shapes = (
        [pltpu.VMEM((Tc * Bt, 4 * Hp), jnp.float32)]           # gate pre-acts
        + [pltpu.VMEM((Tc * Bt, Hp), jnp.bfloat16)
           for _ in range(n_hseq)]                             # inter-layer h seq
        + [pltpu.VMEM((Bt, Hp), jnp.float32)
           for _ in range(2 * num_layers)]                     # h/c carry per layer
    )

    kernel = functools.partial(
        _fused_lstm_fc_kernel, Tc=Tc, Bt=Bt, Hp=Hp,
        num_layers=num_layers, n_hseq=n_hseq, unroll=unroll)

    # VMEM budget + advisory cost estimate.
    def _nbytes(a):
        return int(np.prod(a.shape)) * a.dtype.itemsize

    weight_bytes = sum(_nbytes(a) for a in flat[1:])
    scratch_bytes = (Tc * Bt * 4 * Hp * 4 + n_hseq * Tc * Bt * Hp * 2
                     + 2 * num_layers * Bt * Hp * 4)
    vmem_needed = (weight_bytes + 2 * (Tc * Bt * I * 2) + 2 * (Bt * Op * 4)
                   + scratch_bytes)
    vmem_limit = int(min(100 * 2 ** 20, max(32 * 2 ** 20, 2 * vmem_needed)))

    flops = 2 * Bp * Hp * Op
    for in_l in [I] + [Hp] * (num_layers - 1):
        flops += 2 * S * Bp * (in_l + Hp) * 4 * Hp
    transcendentals = 5 * S * Bp * Hp * num_layers
    bytes_accessed = _nbytes(x_prep) + weight_bytes + Bp * Op * 4

    out = pl.pallas_call(
        kernel,
        out_shape=jax.ShapeDtypeStruct((Bp, Op), jnp.float32),
        grid_spec=pltpu.PrefetchScalarGridSpec(
            num_scalar_prefetch=0,
            grid=(n_btiles, n_chunks),
            in_specs=in_specs,
            out_specs=out_spec,
            scratch_shapes=scratch_shapes),
        compiler_params=pltpu.CompilerParams(
            dimension_semantics=("parallel", "arbitrary"),
            vmem_limit_bytes=vmem_limit),
        cost_estimate=pl.CostEstimate(
            flops=int(flops), transcendentals=int(transcendentals),
            bytes_accessed=int(bytes_accessed)),
    )(*flat)
    return out[:B, :output_size]


# ----------------------------------------------------------------------------
# Parameter init (PyTorch-style) + padding / pre-transposition for the kernel
# ----------------------------------------------------------------------------
def init_params(key, input_size, hidden_size, num_layers, output_size):
    bound = 1.0 / np.sqrt(hidden_size)
    layers = []
    for l in range(num_layers):
        in_sz = input_size if l == 0 else hidden_size
        key, k1, k2, k3, k4 = jax.random.split(key, 5)
        w_ih = jax.random.uniform(k1, (4 * hidden_size, in_sz), jnp.float32, -bound, bound)
        w_hh = jax.random.uniform(k2, (4 * hidden_size, hidden_size), jnp.float32, -bound, bound)
        b_ih = jax.random.uniform(k3, (4 * hidden_size,), jnp.float32, -bound, bound)
        b_hh = jax.random.uniform(k4, (4 * hidden_size,), jnp.float32, -bound, bound)
        layers.append((w_ih, w_hh, b_ih, b_hh))
    key, k5, k6 = jax.random.split(key, 3)
    w_fc = jax.random.uniform(k5, (output_size, hidden_size), jnp.float32, -bound, bound)
    b_fc = jax.random.uniform(k6, (output_size,), jnp.float32, -bound, bound)
    return {"layers": layers, "fc": (w_fc, b_fc)}


def prepare_params(raw, hidden_size):
    """Transpose, fuse biases, zero-pad every gate block to a full multiple of
    128 lanes, and store matmul weights in bf16 (biases stay f32)."""
    H = hidden_size
    Hp = _round_up(H, 128)
    layers = []
    for l, (w_ih, w_hh, b_ih, b_hh) in enumerate(raw["layers"]):
        wih_t = _pad_gate_cols(w_ih.T, H, Hp)                  # (in_l, 4Hp)
        if l > 0:                                              # input is padded hidden
            wih_t = jnp.pad(wih_t, ((0, Hp - H), (0, 0)))      # (Hp, 4Hp)
        whh_t = _pad_gate_cols(w_hh.T, H, Hp)                  # (H, 4Hp)
        whh_t = jnp.pad(whh_t, ((0, Hp - H), (0, 0)))          # (Hp, 4Hp)
        b = _pad_gate_cols((b_ih + b_hh)[None, :], H, Hp)      # (1, 4Hp)
        layers.append((wih_t.astype(jnp.bfloat16),
                       whh_t.astype(jnp.bfloat16),
                       b.astype(jnp.float32)))
    w_fc, b_fc = raw["fc"]
    O = w_fc.shape[0]
    Op = _round_up(O, 128)
    wfc_t = jnp.pad(w_fc.T, ((0, Hp - H), (0, Op - O))).astype(jnp.bfloat16)
    bfc = jnp.pad(b_fc, (0, Op - O))[None, :].astype(jnp.float32)
    return {"layers": layers, "fc": (wfc_t, bfc)}


# ----------------------------------------------------------------------------
# Pure-JAX reference with the SAME numerics (bf16 matmul operands, f32 acc,
# f32 gates/state) so the tolerance can stay tight.
# ----------------------------------------------------------------------------
def reference_forward(x_bsi, raw_params, hidden_size):
    H = hidden_size
    B = x_bsi.shape[0]
    bf16 = jnp.bfloat16
    h_seq = jnp.transpose(x_bsi, (1, 0, 2)).astype(jnp.float32)  # (S, B, I)
    for (w_ih, w_hh, b_ih, b_hh) in raw_params["layers"]:
        wih_t = w_ih.T.astype(bf16)
        whh_t = w_hh.T.astype(bf16)
        b = (b_ih + b_hh)[None, :].astype(jnp.float32)

        def step(carry, x_t, wih_t=wih_t, whh_t=whh_t, b=b):
            h, c = carry
            gates = (jnp.dot(x_t.astype(bf16), wih_t, preferred_element_type=jnp.float32)
                     + jnp.dot(h.astype(bf16), whh_t, preferred_element_type=jnp.float32)
                     + b)
            i = jax.nn.sigmoid(gates[:, 0 * H:1 * H])
            f = jax.nn.sigmoid(gates[:, 1 * H:2 * H])
            g = jnp.tanh(gates[:, 2 * H:3 * H])
            o = jax.nn.sigmoid(gates[:, 3 * H:4 * H])
            c_new = f * c + i * g
            h_new = o * jnp.tanh(c_new)
            return (h_new, c_new), h_new

        init = (jnp.zeros((B, H), jnp.float32), jnp.zeros((B, H), jnp.float32))
        _, h_seq = lax.scan(step, init, h_seq)
    h_last = h_seq[-1]
    w_fc, b_fc = raw_params["fc"]
    return (jnp.dot(h_last.astype(bf16), w_fc.T.astype(bf16),
                    preferred_element_type=jnp.float32) + b_fc[None, :])


# ----------------------------------------------------------------------------
if __name__ == "__main__":
    # Shapes consistent with LSTMForecaster(input_size=4, hidden_size=32,
    # num_layers=2, output_size=1); x is batch_first (batch, seq, input_size).
    batch, seq, input_size = 2, 8, 4
    hidden_size, num_layers, output_size = 32, 2, 1

    key = jax.random.PRNGKey(0)
    key, xk = jax.random.split(key)
    x = jax.random.normal(xk, (batch, seq, input_size), jnp.float32)

    raw_params = init_params(key, input_size, hidden_size, num_layers, output_size)
    kernel_params = prepare_params(raw_params, hidden_size)

    # time_chunk=4 -> 2 time chunks: exercises the chunked grid, the
    # @pl.when(chunk==0) init and the persistent h/c carry across chunks.
    out = lstm_forecaster_forward(x, kernel_params, output_size=output_size,
                                  time_chunk=4, unroll=4)
    out = jax.block_until_ready(out)

    ref = reference_forward(x, raw_params, hidden_size)
    assert out.shape == (batch, output_size)
    np.testing.assert_allclose(np.asarray(out), np.asarray(ref),
                               rtol=2e-3, atol=2e-3)

    print("KERNEL_OK")
</pallas_src>

<mosaic_0001>
module attributes {stable_mosaic.version = 11 : i64} {
  func.func @_fused_lstm_fc_kernel(%arg0: i32, %arg1: i32, %arg2: memref<1x1x64x4xbf16, #tpu.memory_space<vmem>>, %arg3: memref<4x512xbf16, #tpu.memory_space<vmem>>, %arg4: memref<128x512xbf16, #tpu.memory_space<vmem>>, %arg5: memref<1x512xf32, #tpu.memory_space<vmem>>, %arg6: memref<128x512xbf16, #tpu.memory_space<vmem>>, %arg7: memref<128x512xbf16, #tpu.memory_space<vmem>>, %arg8: memref<1x512xf32, #tpu.memory_space<vmem>>, %arg9: memref<128x128xbf16, #tpu.memory_space<vmem>>, %arg10: memref<1x128xf32, #tpu.memory_space<vmem>>, %arg11: memref<16x128xf32, #tpu.memory_space<vmem>>, %arg12: memref<64x512xf32, #tpu.memory_space<vmem>>, %arg13: memref<64x128xbf16, #tpu.memory_space<vmem>>, %arg14: memref<16x128xf32, #tpu.memory_space<vmem>>, %arg15: memref<16x128xf32, #tpu.memory_space<vmem>>, %arg16: memref<16x128xf32, #tpu.memory_space<vmem>>, %arg17: memref<16x128xf32, #tpu.memory_space<vmem>>) attributes {dimension_semantics = [#tpu.dimension_semantics<parallel>, #tpu.dimension_semantics<arbitrary>], iteration_bounds = array<i64: 1, 2>, scalar_prefetch = 0 : i64, scratch_operands = 6 : i64, tpu.core_type = #tpu.core_type<tc>, window_params = [{transform_indices = @transform_0, window_bounds = array<i64: 1, 1, 64, 4>}, {pipeline_mode = #tpu.pipeline_mode<synchronous>, transform_indices = @transform_1, window_bounds = array<i64: 4, 512>}, {pipeline_mode = #tpu.pipeline_mode<synchronous>, transform_indices = @transform_2, window_bounds = array<i64: 128, 512>}, {pipeline_mode = #tpu.pipeline_mode<synchronous>, transform_indices = @transform_3, window_bounds = array<i64: 1, 512>}, {pipeline_mode = #tpu.pipeline_mode<synchronous>, transform_indices = @transform_4, window_bounds = array<i64: 128, 512>}, {pipeline_mode = #tpu.pipeline_mode<synchronous>, transform_indices = @transform_5, window_bounds = array<i64: 128, 512>}, {pipeline_mode = #tpu.pipeline_mode<synchronous>, transform_indices = @transform_6, window_bounds = array<i64: 1, 512>}, {pipeline_mode = #tpu.pipeline_mode<synchronous>, transform_indices = @transform_7, window_bounds = array<i64: 128, 128>}, {pipeline_mode = #tpu.pipeline_mode<synchronous>, transform_indices = @transform_8, window_bounds = array<i64: 1, 128>}, {transform_indices = @transform_9, window_bounds = array<i64: 16, 128>}]} {
    %c0_i32 = arith.constant 0 : i32
    %0 = arith.cmpi eq, %arg1, %c0_i32 : i32
    %1 = arith.extui %0 : i1 to i32
    %c0_i32_0 = arith.constant 0 : i32
    %2 = arith.cmpi ne, %1, %c0_i32_0 : i32
    scf.if %2 {
      %cst_110 = arith.constant 0.000000e+00 : f32
      %305 = vector.broadcast %cst_110 : f32 to vector<16x128xf32>
      %c0_111 = arith.constant 0 : index
      %c0_112 = arith.constant 0 : index
      %306 = vector.load %arg14[%c0_111, %c0_112] : memref<16x128xf32, #tpu.memory_space<vmem>>, vector<16x128xf32>
      tpu.vector_store %arg14[%c0_111, %c0_112], %305 {strides = array<i32>} : memref<16x128xf32, #tpu.memory_space<vmem>>, vector<16x128xf32>,
      %cst_113 = arith.constant 0.000000e+00 : f32
      %307 = vector.broadcast %cst_113 : f32 to vector<16x128xf32>
      %c0_114 = arith.constant 0 : index
      %c0_115 = arith.constant 0 : index
      %308 = vector.load %arg15[%c0_114, %c0_115] : memref<16x128xf32, #tpu.memory_space<vmem>>, vector<16x128xf32>
      tpu.vector_store %arg15[%c0_114, %c0_115], %307 {strides = array<i32>} : memref<16x128xf32, #tpu.memory_space<vmem>>, vector<16x128xf32>,
      %cst_116 = arith.constant 0.000000e+00 : f32
      %309 = vector.broadcast %cst_116 : f32 to vector<16x128xf32>
      %c0_117 = arith.constant 0 : index
      %c0_118 = arith.constant 0 : index
      %310 = vector.load %arg16[%c0_117, %c0_118] : memref<16x128xf32, #tpu.memory_space<vmem>>, vector<16x128xf32>
      tpu.vector_store %arg16[%c0_117, %c0_118], %309 {strides = array<i32>} : memref<16x128xf32, #tpu.memory_space<vmem>>, vector<16x128xf32>,
      %cst_119 = arith.constant 0.000000e+00 : f32
      %311 = vector.broadcast %cst_119 : f32 to vector<16x128xf32>
      %c0_120 = arith.constant 0 : index
      %c0_121 = arith.constant 0 : index
      %312 = vector.load %arg17[%c0_120, %c0_121] : memref<16x128xf32, #tpu.memory_space<vmem>>, vector<16x128xf32>
      tpu.vector_store %arg17[%c0_120, %c0_121], %311 {strides = array<i32>} : memref<16x128xf32, #tpu.memory_space<vmem>>, vector<16x128xf32>,
    } else {
    }
    %c0 = arith.constant 0 : index
    %c0_1 = arith.constant 0 : index
    %c0_2 = arith.constant 0 : index
    %c0_3 = arith.constant 0 : index
    %3 = vector.load %arg2[%c0, %c0_1, %c0_2, %c0_3] : memref<1x1x64x4xbf16, #tpu.memory_space<vmem>>, vector<1x1x64x4xbf16>
    %4 = vector.shape_cast %3 : vector<1x1x64x4xbf16> to vector<64x4xbf16>
    %c0_4 = arith.constant 0 : index
    %c0_5 = arith.constant 0 : index
    %5 = vector.load %arg3[%c0_4, %c0_5] : memref<4x512xbf16, #tpu.memory_space<vmem>>, vector<4x512xbf16>
    %cst = arith.constant dense<0.000000e+00> : vector<64x512xf32>
    %6 = tpu.matmul %4, %5, %cst {dimension_numbers = #tpu.dot_dimension_numbers<[1], [0], [0], [1], [0, 0, 1, 1], [], []>} : vector<64x4xbf16>, vector<4x512xbf16>, vector<64x512xf32> -> vector<64x512xf32>
    %c0_6 = arith.constant 0 : index
    %c0_7 = arith.constant 0 : index
    %7 = vector.load %arg5[%c0_6, %c0_7] : memref<1x512xf32, #tpu.memory_space<vmem>>, vector<1x512xf32>
    %8 = vector.broadcast %7 : vector<1x512xf32> to vector<64x512xf32>
    %9 = arith.addf %6, %8 : vector<64x512xf32>
    %c0_8 = arith.constant 0 : index
    %c0_9 = arith.constant 0 : index
    %10 = vector.load %arg12[%c0_8, %c0_9] : memref<64x512xf32, #tpu.memory_space<vmem>>, vector<64x512xf32>
    tpu.vector_store %arg12[%c0_8, %c0_9], %9 {strides = array<i32>} : memref<64x512xf32, #tpu.memory_space<vmem>>, vector<64x512xf32>,
    %c0_10 = arith.constant 0 : index
    %c0_11 = arith.constant 0 : index
    %11 = vector.load %arg14[%c0_10, %c0_11] : memref<16x128xf32, #tpu.memory_space<vmem>>, vector<16x128xf32>
    %c0_12 = arith.constant 0 : index
    %c0_13 = arith.constant 0 : index
    %12 = vector.load %arg16[%c0_12, %c0_13] : memref<16x128xf32, #tpu.memory_space<vmem>>, vector<16x128xf32>
    %c0_i32_14 = arith.constant 0 : i32
    %c16_i32 = arith.constant 16 : i32
    %13 = arith.muli %c0_i32_14, %c16_i32 : i32
    %14 = tpu.assume_multiple %13, 16 : i32
    %15 = arith.index_cast %14 : i32 to index
    %c0_15 = arith.constant 0 : index
    %16 = vector.load %arg12[%15, %c0_15] : memref<64x512xf32, #tpu.memory_space<vmem>>, vector<16x512xf32>
    %17 = arith.truncf %11 : vector<16x128xf32> to vector<16x128xbf16>
    %c0_16 = arith.constant 0 : index
    %c0_17 = arith.constant 0 : index
    %18 = vector.load %arg4[%c0_16, %c0_17] : memref<128x512xbf16, #tpu.memory_space<vmem>>, vector<128x512xbf16>
    %cst_18 = arith.constant dense<0.000000e+00> : vector<16x512xf32>
    %19 = tpu.matmul %17, %18, %cst_18 {dimension_numbers = #tpu.dot_dimension_numbers<[1], [0], [0], [1], [0, 0, 1, 1], [], []>} : vector<16x128xbf16>, vector<128x512xbf16>, vector<16x512xf32> -> vector<16x512xf32>
    %20 = arith.addf %16, %19 : vector<16x512xf32>
    %21 = vector.extract_strided_slice %20 {offsets = [0, 0], sizes = [16, 128], strides = [1, 1]} : vector<16x512xf32> to vector<16x128xf32>
    %22 = arith.negf %21 : vector<16x128xf32>
    %23 = math.exp %22 : vector<16x128xf32>
    %cst_19 = arith.constant 1.000000e+00 : f32
    %24 = vector.broadcast %cst_19 : f32 to vector<16x128xf32>
    %25 = arith.addf %24, %23 : vector<16x128xf32>
    %26 = arith.divf %24, %25 : vector<16x128xf32>
    %27 = vector.extract_strided_slice %20 {offsets = [0, 128], sizes = [16, 128], strides = [1, 1]} : vector<16x512xf32> to vector<16x128xf32>
    %28 = arith.negf %27 : vector<16x128xf32>
    %29 = math.exp %28 : vector<16x128xf32>
    %cst_20 = arith.constant 1.000000e+00 : f32
    %30 = vector.broadcast %cst_20 : f32 to vector<16x128xf32>
    %31 = arith.addf %30, %29 : vector<16x128xf32>
    %32 = arith.divf %30, %31 : vector<16x128xf32>
    %33 = vector.extract_strided_slice %20 {offsets = [0, 256], sizes = [16, 128], strides = [1, 1]} : vector<16x512xf32> to vector<16x128xf32>
    %34 = math.tanh %33 : vector<16x128xf32>
    %35 = vector.extract_strided_slice %20 {offsets = [0, 384], sizes = [16, 128], strides = [1, 1]} : vector<16x512xf32> to vector<16x128xf32>
    %36 = arith.negf %35 : vector<16x128xf32>
    %37 = math.exp %36 : vector<16x128xf32>
    %cst_21 = arith.constant 1.000000e+00 : f32
    %38 = vector.broadcast %cst_21 : f32 to vector<16x128xf32>
    %39 = arith.addf %38, %37 : vector<16x128xf32>
    %40 = arith.divf %38, %39 : vector<16x128xf32>
    %41 = arith.mulf %32, %12 : vector<16x128xf32>
    %42 = arith.mulf %26, %34 : vector<16x128xf32>
    %43 = arith.addf %41, %42 : vector<16x128xf32>
    %44 = math.tanh %43 : vector<16x128xf32>
    %45 = arith.mulf %40, %44 : vector<16x128xf32>
    %46 = arith.truncf %45 : vector<16x128xf32> to vector<16x128xbf16>
    %47 = arith.index_cast %14 : i32 to index
    %c0_22 = arith.constant 0 : index
    %48 = vector.load %arg13[%47, %c0_22] : memref<64x128xbf16, #tpu.memory_space<vmem>>, vector<16x128xbf16>
    tpu.vector_store %arg13[%47, %c0_22], %46 {strides = array<i32>} : memref<64x128xbf16, #tpu.memory_space<vmem>>, vector<16x128xbf16>,
    %c1_i32 = arith.constant 1 : i32
    %c16_i32_23 = arith.constant 16 : i32
    %49 = arith.muli %c1_i32, %c16_i32_23 : i32
    %50 = tpu.assume_multiple %49, 16 : i32
    %51 = arith.index_cast %50 : i32 to index
    %c0_24 = arith.constant 0 : index
    %52 = vector.load %arg12[%51, %c0_24] : memref<64x512xf32, #tpu.memory_space<vmem>>, vector<16x512xf32>
    %53 = arith.truncf %45 : vector<16x128xf32> to vector<16x128xbf16>
    %c0_25 = arith.constant 0 : index
    %c0_26 = arith.constant 0 : index
    %54 = vector.load %arg4[%c0_25, %c0_26] : memref<128x512xbf16, #tpu.memory_space<vmem>>, vector<128x512xbf16>
    %cst_27 = arith.constant dense<0.000000e+00> : vector<16x512xf32>
    %55 = tpu.matmul %53, %54, %cst_27 {dimension_numbers = #tpu.dot_dimension_numbers<[1], [0], [0], [1], [0, 0, 1, 1], [], []>} : vector<16x128xbf16>, vector<128x512xbf16>, vector<16x512xf32> -> vector<16x512xf32>
    %56 = arith.addf %52, %55 : vector<16x512xf32>
    %57 = vector.extract_strided_slice %56 {offsets = [0, 0], sizes = [16, 128], strides = [1, 1]} : vector<16x512xf32> to vector<16x128xf32>
    %58 = arith.negf %57 : vector<16x128xf32>
    %59 = math.exp %58 : vector<16x128xf32>
    %cst_28 = arith.constant 1.000000e+00 : f32
    %60 = vector.broadcast %cst_28 : f32 to vector<16x128xf32>
    %61 = arith.addf %60, %59 : vector<16x128xf32>
    %62 = arith.divf %60, %61 : vector<16x128xf32>
    %63 = vector.extract_strided_slice %56 {offsets = [0, 128], sizes = [16, 128], strides = [1, 1]} : vector<16x512xf32> to vector<16x128xf32>
    %64 = arith.negf %63 : vector<16x128xf32>
    %65 = math.exp %64 : vector<16x128xf32>
    %cst_29 = arith.constant 1.000000e+00 : f32
    %66 = vector.broadcast %cst_29 : f32 to vector<16x128xf32>
    %67 = arith.addf %66, %65 : vector<16x128xf32>
    %68 = arith.divf %66, %67 : vector<16x128xf32>
    %69 = vector.extract_strided_slice %56 {offsets = [0, 256], sizes = [16, 128], strides = [1, 1]} : vector<16x512xf32> to vector<16x128xf32>
    %70 = math.tanh %69 : vector<16x128xf32>
    %71 = vector.extract_strided_slice %56 {offsets = [0, 384], sizes = [16, 128], strides = [1, 1]} : vector<16x512xf32> to vector<16x128xf32>
    %72 = arith.negf %71 : vector<16x128xf32>
    %73 = math.exp %72 : vector<16x128xf32>
    %cst_30 = arith.constant 1.000000e+00 : f32
    %74 = vector.broadcast %cst_30 : f32 to vector<16x128xf32>
    %75 = arith.addf %74, %73 : vector<16x128xf32>
    %76 = arith.divf %74, %75 : vector<16x128xf32>
    %77 = arith.mulf %68, %43 : vector<16x128xf32>
    %78 = arith.mulf %62, %70 : vector<16x128xf32>
    %79 = arith.addf %77, %78 : vector<16x128xf32>
    %80 = math.tanh %79 : vector<16x128xf32>
    %81 = arith.mulf %76, %80 : vector<16x128xf32>
    %82 = arith.truncf %81 : vector<16x128xf32> to vector<16x128xbf16>
    %83 = arith.index_cast %50 : i32 to index
    %c0_31 = arith.constant 0 : index
    %84 = vector.load %arg13[%83, %c0_31] : memref<64x128xbf16, #tpu.memory_space<vmem>>, vector<16x128xbf16>
    tpu.vector_store %arg13[%83, %c0_31], %82 {strides = array<i32>} : memref<64x128xbf16, #tpu.memory_space<vmem>>, vector<16x128xbf16>,
    %c2_i32 = arith.constant 2 : i32
    %c16_i32_32 = arith.constant 16 : i32
    %85 = arith.muli %c2_i32, %c16_i32_32 : i32
    %86 = tpu.assume_multiple %85, 16 : i32
    %87 = arith.index_cast %86 : i32 to index
    %c0_33 = arith.constant 0 : index
    %88 = vector.load %arg12[%87, %c0_33] : memref<64x512xf32, #tpu.memory_space<vmem>>, vector<16x512xf32>
    %89 = arith.truncf %81 : vector<16x128xf32> to vector<16x128xbf16>
    %c0_34 = arith.constant 0 : index
    %c0_35 = arith.constant 0 : index
    %90 = vector.load %arg4[%c0_34, %c0_35] : memref<128x512xbf16, #tpu.memory_space<vmem>>, vector<128x512xbf16>
    %cst_36 = arith.constant dense<0.000000e+00> : vector<16x512xf32>
    %91 = tpu.matmul %89, %90, %cst_36 {dimension_numbers = #tpu.dot_dimension_numbers<[1], [0], [0], [1], [0, 0, 1, 1], [], []>} : vector<16x128xbf16>, vector<128x512xbf16>, vector<16x512xf32> -> vector<16x512xf32>
    %92 = arith.addf %88, %91 : vector<16x512xf32>
    %93 = vector.extract_strided_slice %92 {offsets = [0, 0], sizes = [16, 128], strides = [1, 1]} : vector<16x512xf32> to vector<16x128xf32>
    %94 = arith.negf %93 : vector<16x128xf32>
    %95 = math.exp %94 : vector<16x128xf32>
    %cst_37 = arith.constant 1.000000e+00 : f32
    %96 = vector.broadcast %cst_37 : f32 to vector<16x128xf32>
    %97 = arith.addf %96, %95 : vector<16x128xf32>
    %98 = arith.divf %96, %97 : vector<16x128xf32>
    %99 = vector.extract_strided_slice %92 {offsets = [0, 128], sizes = [16, 128], strides = [1, 1]} : vector<16x512xf32> to vector<16x128xf32>
    %100 = arith.negf %99 : vector<16x128xf32>
    %101 = math.exp %100 : vector<16x128xf32>
    %cst_38 = arith.constant 1.000000e+00 : f32
    %102 = vector.broadcast %cst_38 : f32 to vector<16x128xf32>
    %103 = arith.addf %102, %101 : vector<16x128xf32>
    %104 = arith.divf %102, %103 : vector<16x128xf32>
    %105 = vector.extract_strided_slice %92 {offsets = [0, 256], sizes = [16, 128], strides = [1, 1]} : vector<16x512xf32> to vector<16x128xf32>
    %106 = math.tanh %105 : vector<16x128xf32>
    %107 = vector.extract_strided_slice %92 {offsets = [0, 384], sizes = [16, 128], strides = [1, 1]} : vector<16x512xf32> to vector<16x128xf32>
    %108 = arith.negf %107 : vector<16x128xf32>
    %109 = math.exp %108 : vector<16x128xf32>
    %cst_39 = arith.constant 1.000000e+00 : f32
    %110 = vector.broadcast %cst_39 : f32 to vector<16x128xf32>
    %111 = arith.addf %110, %109 : vector<16x128xf32>
    %112 = arith.divf %110, %111 : vector<16x128xf32>
    %113 = arith.mulf %104, %79 : vector<16x128xf32>
    %114 = arith.mulf %98, %106 : vector<16x128xf32>
    %115 = arith.addf %113, %114 : vector<16x128xf32>
    %116 = math.tanh %115 : vector<16x128xf32>
    %117 = arith.mulf %112, %116 : vector<16x128xf32>
    %118 = arith.truncf %117 : vector<16x128xf32> to vector<16x128xbf16>
    %119 = arith.index_cast %86 : i32 to index
    %c0_40 = arith.constant 0 : index
    %120 = vector.load %arg13[%119, %c0_40] : memref<64x128xbf16, #tpu.memory_space<vmem>>, vector<16x128xbf16>
    tpu.vector_store %arg13[%119, %c0_40], %118 {strides = array<i32>} : memref<64x128xbf16, #tpu.memory_space<vmem>>, vector<16x128xbf16>,
    %c3_i32 = arith.constant 3 : i32
    %c16_i32_41 = arith.constant 16 : i32
    %121 = arith.muli %c3_i32, %c16_i32_41 : i32
    %122 = tpu.assume_multiple %121, 16 : i32
    %123 = arith.index_cast %122 : i32 to index
    %c0_42 = arith.constant 0 : index
    %124 = vector.load %arg12[%123, %c0_42] : memref<64x512xf32, #tpu.memory_space<vmem>>, vector<16x512xf32>
    %125 = arith.truncf %117 : vector<16x128xf32> to vector<16x128xbf16>
    %c0_43 = arith.constant 0 : index
    %c0_44 = arith.constant 0 : index
    %126 = vector.load %arg4[%c0_43, %c0_44] : memref<128x512xbf16, #tpu.memory_space<vmem>>, vector<128x512xbf16>
    %cst_45 = arith.constant dense<0.000000e+00> : vector<16x512xf32>
    %127 = tpu.matmul %125, %126, %cst_45 {dimension_numbers = #tpu.dot_dimension_numbers<[1], [0], [0], [1], [0, 0, 1, 1], [], []>} : vector<16x128xbf16>, vector<128x512xbf16>, vector<16x512xf32> -> vector<16x512xf32>
    %128 = arith.addf %124, %127 : vector<16x512xf32>
    %129 = vector.extract_strided_slice %128 {offsets = [0, 0], sizes = [16, 128], strides = [1, 1]} : vector<16x512xf32> to vector<16x128xf32>
    %130 = arith.negf %129 : vector<16x128xf32>
    %131 = math.exp %130 : vector<16x128xf32>
    %cst_46 = arith.constant 1.000000e+00 : f32
    %132 = vector.broadcast %cst_46 : f32 to vector<16x128xf32>
    %133 = arith.addf %132, %131 : vector<16x128xf32>
    %134 = arith.divf %132, %133 : vector<16x128xf32>
    %135 = vector.extract_strided_slice %128 {offsets = [0, 128], sizes = [16, 128], strides = [1, 1]} : vector<16x512xf32> to vector<16x128xf32>
    %136 = arith.negf %135 : vector<16x128xf32>
    %137 = math.exp %136 : vector<16x128xf32>
    %cst_47 = arith.constant 1.000000e+00 : f32
    %138 = vector.broadcast %cst_47 : f32 to vector<16x128xf32>
    %139 = arith.addf %138, %137 : vector<16x128xf32>
    %140 = arith.divf %138, %139 : vector<16x128xf32>
    %141 = vector.extract_strided_slice %128 {offsets = [0, 256], sizes = [16, 128], strides = [1, 1]} : vector<16x512xf32> to vector<16x128xf32>
    %142 = math.tanh %141 : vector<16x128xf32>
    %143 = vector.extract_strided_slice %128 {offsets = [0, 384], sizes = [16, 128], strides = [1, 1]} : vector<16x512xf32> to vector<16x128xf32>
    %144 = arith.negf %143 : vector<16x128xf32>
    %145 = math.exp %144 : vector<16x128xf32>
    %cst_48 = arith.constant 1.000000e+00 : f32
    %146 = vector.broadcast %cst_48 : f32 to vector<16x128xf32>
    %147 = arith.addf %146, %145 : vector<16x128xf32>
    %148 = arith.divf %146, %147 : vector<16x128xf32>
    %149 = arith.mulf %140, %115 : vector<16x128xf32>
    %150 = arith.mulf %134, %142 : vector<16x128xf32>
    %151 = arith.addf %149, %150 : vector<16x128xf32>
    %152 = math.tanh %151 : vector<16x128xf32>
    %153 = arith.mulf %148, %152 : vector<16x128xf32>
    %154 = arith.truncf %153 : vector<16x128xf32> to vector<16x128xbf16>
    %155 = arith.index_cast %122 : i32 to index
    %c0_49 = arith.constant 0 : index
    %156 = vector.load %arg13[%155, %c0_49] : memref<64x128xbf16, #tpu.memory_space<vmem>>, vector<16x128xbf16>
    tpu.vector_store %arg13[%155, %c0_49], %154 {strides = array<i32>} : memref<64x128xbf16, #tpu.memory_space<vmem>>, vector<16x128xbf16>,
    %c4_i32 = arith.constant 4 : i32
    %c0_50 = arith.constant 0 : index
    %c0_51 = arith.constant 0 : index
    %157 = vector.load %arg14[%c0_50, %c0_51] : memref<16x128xf32, #tpu.memory_space<vmem>>, vector<16x128xf32>
    tpu.vector_store %arg14[%c0_50, %c0_51], %153 {strides = array<i32>} : memref<16x128xf32, #tpu.memory_space<vmem>>, vector<16x128xf32>,
    %c0_52 = arith.constant 0 : index
    %c0_53 = arith.constant 0 : index
    %158 = vector.load %arg16[%c0_52, %c0_53] : memref<16x128xf32, #tpu.memory_space<vmem>>, vector<16x128xf32>
    tpu.vector_store %arg16[%c0_52, %c0_53], %151 {strides = array<i32>} : memref<16x128xf32, #tpu.memory_space<vmem>>, vector<16x128xf32>,
    %c0_54 = arith.constant 0 : index
    %c0_55 = arith.constant 0 : index
    %159 = vector.load %arg13[%c0_54, %c0_55] : memref<64x128xbf16, #tpu.memory_space<vmem>>, vector<64x128xbf16>
    %c0_56 = arith.constant 0 : index
    %c0_57 = arith.constant 0 : index
    %160 = vector.load %arg6[%c0_56, %c0_57] : memref<128x512xbf16, #tpu.memory_space<vmem>>, vector<128x512xbf16>
    %cst_58 = arith.constant dense<0.000000e+00> : vector<64x512xf32>
    %161 = tpu.matmul %159, %160, %cst_58 {dimension_numbers = #tpu.dot_dimension_numbers<[1], [0], [0], [1], [0, 0, 1, 1], [], []>} : vector<64x128xbf16>, vector<128x512xbf16>, vector<64x512xf32> -> vector<64x512xf32>
    %c0_59 = arith.constant 0 : index
    %c0_60 = arith.constant 0 : index
    %162 = vector.load %arg8[%c0_59, %c0_60] : memref<1x512xf32, #tpu.memory_space<vmem>>, vector<1x512xf32>
    %163 = vector.broadcast %162 : vector<1x512xf32> to vector<64x512xf32>
    %164 = arith.addf %161, %163 : vector<64x512xf32>
    %c0_61 = arith.constant 0 : index
    %c0_62 = arith.constant 0 : index
    %165 = vector.load %arg12[%c0_61, %c0_62] : memref<64x512xf32, #tpu.memory_space<vmem>>, vector<64x512xf32>
    tpu.vector_store %arg12[%c0_61, %c0_62], %164 {strides = array<i32>} : memref<64x512xf32, #tpu.memory_space<vmem>>, vector<64x512xf32>,
    %c0_63 = arith.constant 0 : index
    %c0_64 = arith.constant 0 : index
    %166 = vector.load %arg15[%c0_63, %c0_64] : memref<16x128xf32, #tpu.memory_space<vmem>>, vector<16x128xf32>
    %c0_65 = arith.constant 0 : index
    %c0_66 = arith.constant 0 : index
    %167 = vector.load %arg17[%c0_65, %c0_66] : memref<16x128xf32, #tpu.memory_space<vmem>>, vector<16x128xf32>
    %c0_i32_67 = arith.constant 0 : i32
    %c16_i32_68 = arith.constant 16 : i32
    %168 = arith.muli %c0_i32_67, %c16_i32_68 : i32
    %169 = tpu.assume_multiple %168, 16 : i32
    %170 = arith.index_cast %169 : i32 to index
    %c0_69 = arith.constant 0 : index
    %171 = vector.load %arg12[%170, %c0_69] : memref<64x512xf32, #tpu.memory_space<vmem>>, vector<16x512xf32>
    %172 = arith.truncf %166 : vector<16x128xf32> to vector<16x128xbf16>
    %c0_70 = arith.constant 0 : index
    %c0_71 = arith.constant 0 : index
    %173 = vector.load %arg7[%c0_70, %c0_71] : memref<128x512xbf16, #tpu.memory_space<vmem>>, vector<128x512xbf16>
    %cst_72 = arith.constant dense<0.000000e+00> : vector<16x512xf32>
    %174 = tpu.matmul %172, %173, %cst_72 {dimension_numbers = #tpu.dot_dimension_numbers<[1], [0], [0], [1], [0, 0, 1, 1], [], []>} : vector<16x128xbf16>, vector<128x512xbf16>, vector<16x512xf32> -> vector<16x512xf32>
    %175 = arith.addf %171, %174 : vector<16x512xf32>
    %176 = vector.extract_strided_slice %175 {offsets = [0, 0], sizes = [16, 128], strides = [1, 1]} : vector<16x512xf32> to vector<16x128xf32>
    %177 = arith.negf %176 : vector<16x128xf32>
    %178 = math.exp %177 : vector<16x128xf32>
    %cst_73 = arith.constant 1.000000e+00 : f32
    %179 = vector.broadcast %cst_73 : f32 to vector<16x128xf32>
    %180 = arith.addf %179, %178 : vector<16x128xf32>
    %181 = arith.divf %179, %180 : vector<16x128xf32>
    %182 = vector.extract_strided_slice %175 {offsets = [0, 128], sizes = [16, 128], strides = [1, 1]} : vector<16x512xf32> to vector<16x128xf32>
    %183 = arith.negf %182 : vector<16x128xf32>
    %184 = math.exp %183 : vector<16x128xf32>
    %cst_74 = arith.constant 1.000000e+00 : f32
    %185 = vector.broadcast %cst_74 : f32 to vector<16x128xf32>
    %186 = arith.addf %185, %184 : vector<16x128xf32>
    %187 = arith.divf %185, %186 : vector<16x128xf32>
    %188 = vector.extract_strided_slice %175 {offsets = [0, 256], sizes = [16, 128], strides = [1, 1]} : vector<16x512xf32> to vector<16x128xf32>
    %189 = math.tanh %188 : vector<16x128xf32>
    %190 = vector.extract_strided_slice %175 {offsets = [0, 384], sizes = [16, 128], strides = [1, 1]} : vector<16x512xf32> to vector<16x128xf32>
    %191 = arith.negf %190 : vector<16x128xf32>
    %192 = math.exp %191 : vector<16x128xf32>
    %cst_75 = arith.constant 1.000000e+00 : f32
    %193 = vector.broadcast %cst_75 : f32 to vector<16x128xf32>
    %194 = arith.addf %193, %192 : vector<16x128xf32>
    %195 = arith.divf %193, %194 : vector<16x128xf32>
    %196 = arith.mulf %187, %167 : vector<16x128xf32>
    %197 = arith.mulf %181, %189 : vector<16x128xf32>
    %198 = arith.addf %196, %197 : vector<16x128xf32>
    %199 = math.tanh %198 : vector<16x128xf32>
    %200 = arith.mulf %195, %199 : vector<16x128xf32>
    %c1_i32_76 = arith.constant 1 : i32
    %c16_i32_77 = arith.constant 16 : i32
    %201 = arith.muli %c1_i32_76, %c16_i32_77 : i32
    %202 = tpu.assume_multiple %201, 16 : i32
    %203 = arith.index_cast %202 : i32 to index
    %c0_78 = arith.constant 0 : index
    %204 = vector.load %arg12[%203, %c0_78] : memref<64x512xf32, #tpu.memory_space<vmem>>, vector<16x512xf32>
    %205 = arith.truncf %200 : vector<16x128xf32> to vector<16x128xbf16>
    %c0_79 = arith.constant 0 : index
    %c0_80 = arith.constant 0 : index
    %206 = vector.load %arg7[%c0_79, %c0_80] : memref<128x512xbf16, #tpu.memory_space<vmem>>, vector<128x512xbf16>
    %cst_81 = arith.constant dense<0.000000e+00> : vector<16x512xf32>
    %207 = tpu.matmul %205, %206, %cst_81 {dimension_numbers = #tpu.dot_dimension_numbers<[1], [0], [0], [1], [0, 0, 1, 1], [], []>} : vector<16x128xbf16>, vector<128x512xbf16>, vector<16x512xf32> -> vector<16x512xf32>
    %208 = arith.addf %204, %207 : vector<16x512xf32>
    %209 = vector.extract_strided_slice %208 {offsets = [0, 0], sizes = [16, 128], strides = [1, 1]} : vector<16x512xf32> to vector<16x128xf32>
    %210 = arith.negf %209 : vector<16x128xf32>
    %211 = math.exp %210 : vector<16x128xf32>
    %cst_82 = arith.constant 1.000000e+00 : f32
    %212 = vector.broadcast %cst_82 : f32 to vector<16x128xf32>
    %213 = arith.addf %212, %211 : vector<16x128xf32>
    %214 = arith.divf %212, %213 : vector<16x128xf32>
    %215 = vector.extract_strided_slice %208 {offsets = [0, 128], sizes = [16, 128], strides = [1, 1]} : vector<16x512xf32> to vector<16x128xf32>
    %216 = arith.negf %215 : vector<16x128xf32>
    %217 = math.exp %216 : vector<16x128xf32>
    %cst_83 = arith.constant 1.000000e+00 : f32
    %218 = vector.broadcast %cst_83 : f32 to vector<16x128xf32>
    %219 = arith.addf %218, %217 : vector<16x128xf32>
    %220 = arith.divf %218, %219 : vector<16x128xf32>
    %221 = vector.extract_strided_slice %208 {offsets = [0, 256], sizes = [16, 128], strides = [1, 1]} : vector<16x512xf32> to vector<16x128xf32>
    %222 = math.tanh %221 : vector<16x128xf32>
    %223 = vector.extract_strided_slice %208 {offsets = [0, 384], sizes = [16, 128], strides = [1, 1]} : vector<16x512xf32> to vector<16x128xf32>
    %224 = arith.negf %223 : vector<16x128xf32>
    %225 = math.exp %224 : vector<16x128xf32>
    %cst_84 = arith.constant 1.000000e+00 : f32
    %226 = vector.broadcast %cst_84 : f32 to vector<16x128xf32>
    %227 = arith.addf %226, %225 : vector<16x128xf32>
    %228 = arith.divf %226, %227 : vector<16x128xf32>
    %229 = arith.mulf %220, %198 : vector<16x128xf32>
    %230 = arith.mulf %214, %222 : vector<16x128xf32>
    %231 = arith.addf %229, %230 : vector<16x128xf32>
    %232 = math.tanh %231 : vector<16x128xf32>
    %233 = arith.mulf %228, %232 : vector<16x128xf32>
    %c2_i32_85 = arith.constant 2 : i32
    %c16_i32_86 = arith.constant 16 : i32
    %234 = arith.muli %c2_i32_85, %c16_i32_86 : i32
    %235 = tpu.assume_multiple %234, 16 : i32
    %236 = arith.index_cast %235 : i32 to index
    %c0_87 = arith.constant 0 : index
    %237 = vector.load %arg12[%236, %c0_87] : memref<64x512xf32, #tpu.memory_space<vmem>>, vector<16x512xf32>
    %238 = arith.truncf %233 : vector<16x128xf32> to vector<16x128xbf16>
    %c0_88 = arith.constant 0 : index
    %c0_89 = arith.constant 0 : index
    %239 = vector.load %arg7[%c0_88, %c0_89] : memref<128x512xbf16, #tpu.memory_space<vmem>>, vector<128x512xbf16>
    %cst_90 = arith.constant dense<0.000000e+00> : vector<16x512xf32>
    %240 = tpu.matmul %238, %239, %cst_90 {dimension_numbers = #tpu.dot_dimension_numbers<[1], [0], [0], [1], [0, 0, 1, 1], [], []>} : vector<16x128xbf16>, vector<128x512xbf16>, vector<16x512xf32> -> vector<16x512xf32>
    %241 = arith.addf %237, %240 : vector<16x512xf32>
    %242 = vector.extract_strided_slice %241 {offsets = [0, 0], sizes = [16, 128], strides = [1, 1]} : vector<16x512xf32> to vector<16x128xf32>
    %243 = arith.negf %242 : vector<16x128xf32>
    %244 = math.exp %243 : vector<16x128xf32>
    %cst_91 = arith.constant 1.000000e+00 : f32
    %245 = vector.broadcast %cst_91 : f32 to vector<16x128xf32>
    %246 = arith.addf %245, %244 : vector<16x128xf32>
    %247 = arith.divf %245, %246 : vector<16x128xf32>
    %248 = vector.extract_strided_slice %241 {offsets = [0, 128], sizes = [16, 128], strides = [1, 1]} : vector<16x512xf32> to vector<16x128xf32>
    %249 = arith.negf %248 : vector<16x128xf32>
    %250 = math.exp %249 : vector<16x128xf32>
    %cst_92 = arith.constant 1.000000e+00 : f32
    %251 = vector.broadcast %cst_92 : f32 to vector<16x128xf32>
    %252 = arith.addf %251, %250 : vector<16x128xf32>
    %253 = arith.divf %251, %252 : vector<16x128xf32>
    %254 = vector.extract_strided_slice %241 {offsets = [0, 256], sizes = [16, 128], strides = [1, 1]} : vector<16x512xf32> to vector<16x128xf32>
    %255 = math.tanh %254 : vector<16x128xf32>
    %256 = vector.extract_strided_slice %241 {offsets = [0, 384], sizes = [16, 128], strides = [1, 1]} : vector<16x512xf32> to vector<16x128xf32>
    %257 = arith.negf %256 : vector<16x128xf32>
    %258 = math.exp %257 : vector<16x128xf32>
    %cst_93 = arith.constant 1.000000e+00 : f32
    %259 = vector.broadcast %cst_93 : f32 to vector<16x128xf32>
    %260 = arith.addf %259, %258 : vector<16x128xf32>
    %261 = arith.divf %259, %260 : vector<16x128xf32>
    %262 = arith.mulf %253, %231 : vector<16x128xf32>
    %263 = arith.mulf %247, %255 : vector<16x128xf32>
    %264 = arith.addf %262, %263 : vector<16x128xf32>
    %265 = math.tanh %264 : vector<16x128xf32>
    %266 = arith.mulf %261, %265 : vector<16x128xf32>
    %c3_i32_94 = arith.constant 3 : i32
    %c16_i32_95 = arith.constant 16 : i32
    %267 = arith.muli %c3_i32_94, %c16_i32_95 : i32
    %268 = tpu.assume_multiple %267, 16 : i32
    %269 = arith.index_cast %268 : i32 to index
    %c0_96 = arith.constant 0 : index
    %270 = vector.load %arg12[%269, %c0_96] : memref<64x512xf32, #tpu.memory_space<vmem>>, vector<16x512xf32>
    %271 = arith.truncf %266 : vector<16x128xf32> to vector<16x128xbf16>
    %c0_97 = arith.constant 0 : index
    %c0_98 = arith.constant 0 : index
    %272 = vector.load %arg7[%c0_97, %c0_98] : memref<128x512xbf16, #tpu.memory_space<vmem>>, vector<128x512xbf16>
    %cst_99 = arith.constant dense<0.000000e+00> : vector<16x512xf32>
    %273 = tpu.matmul %271, %272, %cst_99 {dimension_numbers = #tpu.dot_dimension_numbers<[1], [0], [0], [1], [0, 0, 1, 1], [], []>} : vector<16x128xbf16>, vector<128x512xbf16>, vector<16x512xf32> -> vector<16x512xf32>
    %274 = arith.addf %270, %273 : vector<16x512xf32>
    %275 = vector.extract_strided_slice %274 {offsets = [0, 0], sizes = [16, 128], strides = [1, 1]} : vector<16x512xf32> to vector<16x128xf32>
    %276 = arith.negf %275 : vector<16x128xf32>
    %277 = math.exp %276 : vector<16x128xf32>
    %cst_100 = arith.constant 1.000000e+00 : f32
    %278 = vector.broadcast %cst_100 : f32 to vector<16x128xf32>
    %279 = arith.addf %278, %277 : vector<16x128xf32>
    %280 = arith.divf %278, %279 : vector<16x128xf32>
    %281 = vector.extract_strided_slice %274 {offsets = [0, 128], sizes = [16, 128], strides = [1, 1]} : vector<16x512xf32> to vector<16x128xf32>
    %282 = arith.negf %281 : vector<16x128xf32>
    %283 = math.exp %282 : vector<16x128xf32>
    %cst_101 = arith.constant 1.000000e+00 : f32
    %284 = vector.broadcast %cst_101 : f32 to vector<16x128xf32>
    %285 = arith.addf %284, %283 : vector<16x128xf32>
    %286 = arith.divf %284, %285 : vector<16x128xf32>
    %287 = vector.extract_strided_slice %274 {offsets = [0, 256], sizes = [16, 128], strides = [1, 1]} : vector<16x512xf32> to vector<16x128xf32>
    %288 = math.tanh %287 : vector<16x128xf32>
    %289 = vector.extract_strided_slice %274 {offsets = [0, 384], sizes = [16, 128], strides = [1, 1]} : vector<16x512xf32> to vector<16x128xf32>
    %290 = arith.negf %289 : vector<16x128xf32>
    %291 = math.exp %290 : vector<16x128xf32>
    %cst_102 = arith.constant 1.000000e+00 : f32
    %292 = vector.broadcast %cst_102 : f32 to vector<16x128xf32>
    %293 = arith.addf %292, %291 : vector<16x128xf32>
    %294 = arith.divf %292, %293 : vector<16x128xf32>
    %295 = arith.mulf %286, %264 : vector<16x128xf32>
    %296 = arith.mulf %280, %288 : vector<16x128xf32>
    %297 = arith.addf %295, %296 : vector<16x128xf32>
    %298 = math.tanh %297 : vector<16x128xf32>
    %299 = arith.mulf %294, %298 : vector<16x128xf32>
    %c4_i32_103 = arith.constant 4 : i32
    %c0_104 = arith.constant 0 : index
    %c0_105 = arith.constant 0 : index
    %300 = vector.load %arg15[%c0_104, %c0_105] : memref<16x128xf32, #tpu.memory_space<vmem>>, vector<16x128xf32>
    tpu.vector_store %arg15[%c0_104, %c0_105], %299 {strides = array<i32>} : memref<16x128xf32, #tpu.memory_space<vmem>>, vector<16x128xf32>,
    %c0_106 = arith.constant 0 : index
    %c0_107 = arith.constant 0 : index
    %301 = vector.load %arg17[%c0_106, %c0_107] : memref<16x128xf32, #tpu.memory_space<vmem>>, vector<16x128xf32>
    tpu.vector_store %arg17[%c0_106, %c0_107], %297 {strides = array<i32>} : memref<16x128xf32, #tpu.memory_space<vmem>>, vector<16x128xf32>,
    %c1_i32_108 = arith.constant 1 : i32
    %302 = arith.cmpi eq, %arg1, %c1_i32_108 : i32
    %303 = arith.extui %302 : i1 to i32
    %c0_i32_109 = arith.constant 0 : i32
    %304 = arith.cmpi ne, %303, %c0_i32_109 : i32
    scf.if %304 {
      %305 = arith.truncf %299 : vector<16x128xf32> to vector<16x128xbf16>
      %c0_110 = arith.constant 0 : index
      %c0_111 = arith.constant 0 : index
      %306 = vector.load %arg9[%c0_110, %c0_111] : memref<128x128xbf16, #tpu.memory_space<vmem>>, vector<128x128xbf16>
      %cst_112 = arith.constant dense<0.000000e+00> : vector<16x128xf32>
      %307 = tpu.matmul %305, %306, %cst_112 {dimension_numbers = #tpu.dot_dimension_numbers<[1], [0], [0], [1], [0, 0, 1, 1], [], []>} : vector<16x128xbf16>, vector<128x128xbf16>, vector<16x128xf32> -> vector<16x128xf32>
      %c0_113 = arith.constant 0 : index
      %c0_114 = arith.constant 0 : index
      %308 = vector.load %arg10[%c0_113, %c0_114] : memref<1x128xf32, #tpu.memory_space<vmem>>, vector<1x128xf32>
      %309 = vector.broadcast %308 : vector<1x128xf32> to vector<16x128xf32>
      %310 = arith.addf %307, %309 : vector<16x128xf32>
      %c0_115 = arith.constant 0 : index
      %c0_116 = arith.constant 0 : index
      %311 = vector.load %arg11[%c0_115, %c0_116] : memref<16x128xf32, #tpu.memory_space<vmem>>, vector<16x128xf32>
      tpu.vector_store %arg11[%c0_115, %c0_116], %310 {strides = array<i32>} : memref<16x128xf32, #tpu.memory_space<vmem>>, vector<16x128xf32>,
    } else {
    }
    return
  }
  func.func @transform_0(%arg0: i32, %arg1: i32) -> (i32, i32, i32, i32) {
    %c0_i32 = arith.constant 0 : i32
    %c0_i32_0 = arith.constant 0 : i32
    %c0_i32_1 = arith.constant 0 : i32
    return %arg0, %arg1, %c0_i32, %c0_i32_0 : i32, i32, i32, i32
  }
  func.func @transform_1(%arg0: i32, %arg1: i32) -> (i32, i32) {
    %c0_i32 = arith.constant 0 : i32
    %c0_i32_0 = arith.constant 0 : i32
    %c0_i32_1 = arith.constant 0 : i32
    return %c0_i32, %c0_i32_0 : i32, i32
  }
  func.func @transform_2(%arg0: i32, %arg1: i32) -> (i32, i32) {
    %c0_i32 = arith.constant 0 : i32
    %c0_i32_0 = arith.constant 0 : i32
    %c0_i32_1 = arith.constant 0 : i32
    return %c0_i32, %c0_i32_0 : i32, i32
  }
  func.func @transform_3(%arg0: i32, %arg1: i32) -> (i32, i32) {
    %c0_i32 = arith.constant 0 : i32
    %c0_i32_0 = arith.constant 0 : i32
    %c0_i32_1 = arith.constant 0 : i32
    return %c0_i32, %c0_i32_0 : i32, i32
  }
  func.func @transform_4(%arg0: i32, %arg1: i32) -> (i32, i32) {
    %c0_i32 = arith.constant 0 : i32
    %c0_i32_0 = arith.constant 0 : i32
    %c0_i32_1 = arith.constant 0 : i32
    return %c0_i32, %c0_i32_0 : i32, i32
  }
  func.func @transform_5(%arg0: i32, %arg1: i32) -> (i32, i32) {
    %c0_i32 = arith.constant 0 : i32
    %c0_i32_0 = arith.constant 0 : i32
    %c0_i32_1 = arith.constant 0 : i32
    return %c0_i32, %c0_i32_0 : i32, i32
  }
  func.func @transform_6(%arg0: i32, %arg1: i32) -> (i32, i32) {
    %c0_i32 = arith.constant 0 : i32
    %c0_i32_0 = arith.constant 0 : i32
    %c0_i32_1 = arith.constant 0 : i32
    return %c0_i32, %c0_i32_0 : i32, i32
  }
  func.func @transform_7(%arg0: i32, %arg1: i32) -> (i32, i32) {
    %c0_i32 = arith.constant 0 : i32
    %c0_i32_0 = arith.constant 0 : i32
    %c0_i32_1 = arith.constant 0 : i32
    return %c0_i32, %c0_i32_0 : i32, i32
  }
  func.func @transform_8(%arg0: i32, %arg1: i32) -> (i32, i32) {
    %c0_i32 = arith.constant 0 : i32
    %c0_i32_0 = arith.constant 0 : i32
    %c0_i32_1 = arith.constant 0 : i32
    return %c0_i32, %c0_i32_0 : i32, i32
  }
  func.func @transform_9(%arg0: i32, %arg1: i32) -> (i32, i32) {
    %c0_i32 = arith.constant 0 : i32
    %c0_i32_0 = arith.constant 0 : i32
    return %arg0, %c0_i32 : i32, i32
  }
}

</mosaic_0001>

<bundles_post_ra>
// kernel: lstm_forecaster_forward.1
= control target key start
LH: loop header
LB: loop body
LE: loop exit
PB: predicated region body
PF: predicated region fallthrough
CT: control target
= control target key end

     0   :  { %14 = vsyncpa [#allocation9], 0  ;;  %s5468_s0 = inlined_call_operand.vmem [shape: bf16[1,2,64,4], index: 0, kind: input, shape index: {}]   ;;  %s5469_s1 = inlined_call_operand.vmem [shape: bf16[4,512], index: 1, kind: input, shape index: {}]   ;;  %s5470_s2 = inlined_call_operand.hbm [shape: bf16[128,512], index: 2, kind: input, shape index: {}]   ;;  %s5471_s3 = inlined_call_operand.vmem [shape: f32[1,512], index: 3, kind: input, shape index: {}]   ;;  %s5472_s4 = inlined_call_operand.hbm [shape: bf16[128,512], index: 4, kind: input, shape index: {}]   ;;  %s5473_s5 = inlined_call_operand.hbm [shape: bf16[128,512], index: 5, kind: input, shape index: {}]   ;;  %s5474_s6 = inlined_call_operand.vmem [shape: f32[1,512], index: 6, kind: input, shape index: {}]   ;;  %s5475_s7 = inlined_call_operand.vmem [shape: bf16[128,128], index: 7, kind: input, shape index: {}]   ;;  %s5476_s8 = inlined_call_operand.vmem [shape: f32[1,128], index: 8, kind: input, shape index: {}]   ;;  %s5477_s9 = inlined_call_operand.vmem [shape: f32[16,128], index: 9, kind: output, shape index: {}]  }
   0x1   :  { %15 = vsyncpa [#allocation11], 0  ;;  %s4622_s30 = smov 0   ;;  %s4624_s10 = smov 0  }
   0x2   :  { %s4626_s11 = smov 0  }
   0x3 LB: > { %s3574_s12 = sadd.s32 4294967295, %s4560_s11   ;;  %p3575_p0 = scmp.ge.s32.totalorder %s4560_s11, 1  ;;  %s4560_s11 = sphi %s4626_s11, %s21_s11   ;;  %s4556_s10 = sphi %s4624_s10, %s5576_s10   ;;  %s4552_s30 = sphi %s4622_s30, %s5575_s30  }
   0x4   : > { %p260_p1 = scmp.lt.s32.totalorder %s4560_s11, 3  ;;  %p4640_p2 = scmp.eq.s32.totalorder %s3574_s12, 0 }
   0x5   : > { %s4562_s15 = smov [#allocation10]   ;;  %s30_s18 = sadd.s32 1, %s4556_s10 }
   0x6   : > { %p4644_p3 = pnand %p3575_p0, %p260_p1  ;;  %s291_s16 = sshll.u32 %s4562_s15, 4  ;;  %s292_s16 = int_to_ptr.vmem [resolvable:$true] %s291_s16 }
   0x7   : > { %p4657_p6 = scmp.ge.s32.totalorder %s30_s18, 2  ;;  %s4563_s20 = smov [#allocation8]  }
   0x8   : > { %p3937_p4 = pneg %p4644_p3  ;;  %s275_s21 = sshll.u32 %s4563_s20, 4  ;;  %s276_s21 = int_to_ptr.vmem [resolvable:$true] %s275_s21 }
   0x9   : > { %s4463_s22 = scalar_lea.vmem %s292_s16, 4096  ;;  %p4471_p11 = scmp.lt.s32.totalorder %s292_s16, %s292_s16 }
   0xa   : > { %p4652_p5 = pnand %p4640_p2, %p3937_p4  ;;  %p4464_p8 = scmp.ne.s32.totalorder %s292_s16, %s4463_s22 }
   0xb   : > { %p4472_p12 = scmp.lt.s32.totalorder %s4463_s22, %s4463_s22 }
   0xc   : > { %p4454_p7 = pneg %p4652_p5 }
   0xd   : > { %p4473_p13 = por %p4472_p12, %p4471_p11 }
   0xe   : > { %p4466_p9 = pnand %p4464_p8, %p4454_p7 }
  0x10   : > { %p4467_p10 = pneg %p4466_p9 }
  0x12   : > { %p4474_p0 = pnand %p4473_p13, %p4467_p10 }
  0x14   : > { %4477 = shalt.err (!%p4474_p0)
}
  0x15   : > { %s4564_s23 = smov 256   ;;  %s4565_s24 = smov 16  }
  0x16   : > { %3943 = dma.hbm_to_vmem [thread:$0]  (!%p4652_p5), %s5472_s4, 4096, %s292_s16, [#allocation11], %s4564_s23, %s4564_s23, %s4565_s24  }
  0x17   : > { %s5578_s18 = smov (%p4657_p6, %s30_s18), 0  ;;  %s4489_s27 = scalar_lea.vmem %s276_s21, 4096 }
  0x18   : > { %p4490_p1 = scmp.ne.s32.totalorder %s276_s21, %s4489_s27  ;;  %p4497_p9 = scmp.lt.s32.totalorder %s276_s21, %s276_s21 }
  0x19   : > { %p4498_p10 = scmp.lt.s32.totalorder %s4489_s27, %s4489_s27 }
  0x1a   : > { %p4492_p4 = pnand %p4490_p1, %p4454_p7 }
  0x1b   : > { %p4499_p11 = por %p4498_p10, %p4497_p9 }
  0x1c   : > { %p4493_p8 = pneg %p4492_p4 }
  0x1e   : > { %p4500_p12 = pnand %p4499_p11, %p4493_p8 }
  0x20   : > { %4503 = shalt.err (!%p4500_p12)
}
  0x21   : > { %3940 = dma.hbm_to_vmem [thread:$0]  (!%p4652_p5), %s5470_s2, 4096, %s276_s21, [#allocation9], %s4564_s23, %s4564_s23, %s4565_s24  }
  0x22   : > { %s4566_s12 = smov [#allocation12]  }
  0x23   : > { %s304_s15 = sshll.u32 %s4566_s12, 4  ;;  %s305_s15 = int_to_ptr.vmem [resolvable:$true] %s304_s15 }
  0x24   : > { %s4515_s16 = scalar_lea.vmem %s305_s15, 4096  ;;  %p4523_p1 = scmp.lt.s32.totalorder %s305_s15, %s305_s15 }
  0x25   : > { %p4516_p6 = scmp.ne.s32.totalorder %s305_s15, %s4515_s16  ;;  %p4524_p4 = scmp.lt.s32.totalorder %s4515_s16, %s4515_s16 }
  0x27   : > { %p4518_p13 = pnand %p4516_p6, %p4454_p7  ;;  %p4525_p8 = por %p4524_p4, %p4523_p1 }
  0x29   : > { %p4519_p0 = pneg %p4518_p13 }
  0x2b   : > { %p4526_p9 = pnand %p4525_p8, %p4519_p0 }
  0x2d   : > { %4529 = shalt.err (!%p4526_p9)
}
  0x2e   : > { %3946 = dma.hbm_to_vmem [thread:$0]  (!%p4652_p5), %s5473_s5, 4096, %s305_s15, [#allocation11], %s4564_s23, %s4564_s23, %s4565_s24  }
  0x2f   : > { %341 = sbr.rel (%p4644_p3) target bundleno = 2403 (0x963), region = 56 }
  0x34   : > { %4543 = dma.done.wait (%p4640_p2), [#allocation9], 4096  }
  0x35   : > { %4545 = vsyncadd (%p4640_p2), [#allocation9], 4294963200 }
  0x36   : > { %4547 = dma.done.wait (%p4640_p2), [#allocation11], 8192  }
  0x37   : > { %4549 = vsyncadd (%p4640_p2), [#allocation11], 4294959104  ;;  %p391_p7 = scmp.lt.s32.totalorder %s4552_s30, 1  ;;  %p3586_p3 = scmp.ne.s32.totalorder %s4552_s30, 0 }
  0x39   : > { %s392_s17 = scalar_select %p391_p7, %s4552_s30, 1 }
  0x3a   : > { %408 = sbr.rel (%p3586_p3) target bundleno = 68 (0x44), region = 72 }
  0x3b   : > { %s3867_s21 = sshll.u32 %s392_s17, 5 }
  0x3c   : > { %s4715_s23 = scalar_lea.vmem %s5468_s0, %s3867_s21 }
  0x3f   : > { %v4567_v0 = vmov 0.0  }
  0x40   : > { %409 = vst [vmem:[#allocation4] sm:$0xff] %v4567_v0  ;;  %410 = vst [vmem:[#allocation4 + $0x8] sm:$0xff] %v4567_v0 }
  0x41   : > { %411 = vst [vmem:[#allocation5 + $0x8] sm:$0xff] %v4567_v0  ;;  %412 = vst [vmem:[#allocation5] sm:$0xff] %v4567_v0 }
  0x42   : > { %413 = vst [vmem:[#allocation6 + $0x8] sm:$0xff] %v4567_v0  ;;  %414 = vst [vmem:[#allocation6] sm:$0xff] %v4567_v0 }
  0x43   : > { %415 = vst [vmem:[#allocation7] sm:$0xff] %v4567_v0  ;;  %416 = vst [vmem:[#allocation7 + $0x8] sm:$0xff] %v4567_v0 }
  0x44 PF: > { %v425_v1 = vld [vmem:[%s5469_s1] sm:$0xff]  ;;  %v428_v2 = vlaneseq  ;;  %v4568_v3 = vmov 1983009808   ;;  %v5482_v5 = vmov 0   ;;  %vm499_vm0 = vcmask 1041408   ;;  %v4001_v27 = vld [vmem:[%s4715_s23 + $0x8] sm:$0xff]  }
  0x45   : > { %v471_v4 = vunpack.c.l.s4 %v4568_v3  ;;  %544 = vmatprep.mubr.bf16.mxu0 %v5482_v5  ;;  %617 = vmatprep.mubr.bf16.mxu1 %v5482_v5  ;;  %v469_v8 = vcombine.high %v425_v1, %v425_v1  ;;  %v4726_v12 = vld [vmem:[#allocation8 + $0xe4] ss:$16 sps:$4 sm:$0xff]   ;;  %v4728_v17 = vld [vmem:[#allocation8 + $0xec] ss:$16 sps:$4 sm:$0xff]   ;;  %v4731_v19 = vld [vmem:[#allocation8 + $0xe0] ss:$16 sps:$4 sm:$0xff]  }
  0x46   : > { %v4723_v6 = vshrl.u32 %v428_v2, 7  ;;  %v3988_v18 = vld [vmem:[%s4715_s23] sm:$0xff]   ;;  %v4733_v20 = vld [vmem:[#allocation8 + $0xe8] ss:$16 sps:$4 sm:$0xff]   ;;  %vm486_vm1 = vcmask 31744   ;;  %v4014_v36 = vld [vmem:[%s4715_s23 + $0x10] sm:$0xff]  }
  0x47   : > { %v472_v7 = vunpack.c.0.s8 %v471_v4  ;;  %v4735_v21 = vld [vmem:[#allocation8 + $0xc4] ss:$16 sps:$4 sm:$0xff]   ;;  %v4739_v22 = vld [vmem:[#allocation8 + $0xcc] ss:$16 sps:$4 sm:$0xff]   ;;  %v4743_v23 = vld [vmem:[#allocation8 + $0xc0] ss:$16 sps:$4 sm:$0xff]  }
  0x48   : > { %5490 = vst [vmem:[#allocation15_spill] sm:$0xff] %v4723_v6  ;;  %v4747_v24 = vld [vmem:[#allocation8 + $0xc8] ss:$16 sps:$4 sm:$0xff]   ;;  %v4749_v25 = vld [vmem:[#allocation8 + $0xa4] ss:$16 sps:$4 sm:$0xff]   ;;  %v5481_v59 = vsub.s32 0, %v4723_v6 }
  0x49   : > { %v475_v9 = vsub.s32 %v472_v7, %v4723_v6  ;;  %v4753_v26 = vld [vmem:[#allocation8 + $0xac] ss:$16 sps:$4 sm:$0xff]   ;;  %v4758_v28 = vld [vmem:[#allocation8 + $0xa0] ss:$16 sps:$4 sm:$0xff]   ;;  %v4762_v29 = vld [vmem:[#allocation8 + $0xa8] ss:$16 sps:$4 sm:$0xff]  }
  0x4a   : > { %v4766_v30 = vld [vmem:[#allocation8 + $0x84] ss:$16 sps:$4 sm:$0xff]   ;;  %v4768_v31 = vld [vmem:[#allocation8 + $0x8c] ss:$16 sps:$4 sm:$0xff]   ;;  %v4774_v32 = vld [vmem:[#allocation8 + $0x80] ss:$16 sps:$4 sm:$0xff]  }
  0x4b   : > { %v476_v10 = vrot.slane %v425_v1, %v475_v9  ;;  %v483_v11 = vrot.slane %v469_v8, %v475_v9  ;;  %v4776_v33 = vld [vmem:[#allocation8 + $0x88] ss:$16 sps:$4 sm:$0xff]   ;;  %v4780_v34 = vld [vmem:[#allocation8 + $0x64] ss:$16 sps:$4 sm:$0xff]   ;;  %v4782_v35 = vld [vmem:[#allocation8 + $0x6c] ss:$16 sps:$4 sm:$0xff]  }
  0x4c   : > { %v4787_v37 = vld [vmem:[#allocation8 + $0x60] ss:$16 sps:$4 sm:$0xff]   ;;  %v4789_v38 = vld [vmem:[#allocation8 + $0x68] ss:$16 sps:$4 sm:$0xff]   ;;  %v4791_v39 = vld [vmem:[#allocation8 + $0x44] ss:$16 sps:$4 sm:$0xff]  }
  0x4d   : > { %v484_v13 = vcombine.high %v476_v10, %v476_v10  ;;  %v485_v14 = vcombine.high %v483_v11, %v483_v11  ;;  %v501_v15 = vsel %vm499_vm0, %v476_v10, 0  ;;  %v507_v16 = vsel %vm499_vm0, %v483_v11, 0  ;;  %v4793_v40 = vld [vmem:[#allocation8 + $0x4c] ss:$16 sps:$4 sm:$0xff]   ;;  %v4799_v41 = vld [vmem:[#allocation8 + $0x40] ss:$16 sps:$4 sm:$0xff]  }
  0x4e   : > { %v4801_v42 = vld [vmem:[#allocation8 + $0x48] ss:$16 sps:$4 sm:$0xff]   ;;  %v4805_v43 = vld [vmem:[#allocation8 + $0x24] ss:$16 sps:$4 sm:$0xff]   ;;  %v4807_v44 = vld [vmem:[#allocation8 + $0x2c] ss:$16 sps:$4 sm:$0xff]  }
  0x4f   : > { %3591 = vmatprep.subr.msk.bf16.mxu0 %vm499_vm0, %v484_v13  ;;  %3596 = vmatprep.subr.msk.bf16.mxu1 %vm499_vm0, %v485_v14  ;;  %v4027_v45 = vld [vmem:[%s4715_s23 + $0x18] sm:$0xff]   ;;  %v4816_v46 = vld [vmem:[#allocation8 + $0x20] ss:$16 sps:$4 sm:$0xff]   ;;  %v4820_v48 = vld [vmem:[#allocation8 + $0x4] ss:$16 sps:$4 sm:$0xff]   ;;  %v5478_v60 = vsub.s32 2, %v4723_v6 }
  0x50   : > { %527 = vmatpush1.bf16.msra.mxu0 %v501_v15  ;;  %600 = vmatpush1.bf16.msra.mxu1 %v507_v16  ;;  %v4818_v47 = vld [vmem:[#allocation8 + $0x28] ss:$16 sps:$4 sm:$0xff]   ;;  %v4822_v49 = vld [vmem:[#allocation8 + $0xc] ss:$16 sps:$4 sm:$0xff]   ;;  %v4828_v50 = vld [vmem:[#allocation8] ss:$16 sps:$4 sm:$0xff]  }
  0x51   : > { %898 = vmatprep.subr.bf16.mxu0 %v4726_v12  ;;  %941 = vmatprep.subr.bf16.mxu1 %v4728_v17  ;;  %v4830_v51 = vld [vmem:[#allocation8 + $0x8] ss:$16 sps:$4 sm:$0xff]   ;;  %v690_v52 = vld [vmem:[#allocation4] sm:$0xff]  ;;  %v5480_v0 = vsub.s32 1, %v4723_v6  ;;  %v5479_v1 = vsub.s32 3, %v4723_v6  ;;  %p3853_p2 = scmp.ne.s32.totalorder %s4552_s30, 1 }
  0x52   : > { %v691_v53 = vld [vmem:[#allocation4 + $0x8] sm:$0xff]  ;;  %v426_v61 = vld [vmem:[%s5471_s3] sm:$0xf] }
  0x53   : > { %3592 = vmatmul.mubr.msk.bf16.vlgmr.msra.gmra.mxu0 %vm486_vm1, %v3988_v18  ;;  %3597 = vmatmul.mubr.msk.bf16.vlgmr.msra.gmra.mxu1 %vm486_vm1, %v3988_v18  ;;  %v705_v54 = vpack.c.bf16 %v691_v53, %v690_v52  ;;  %v431_v4 = vrot.slane %v426_v61, %v5481_v59  ;;  %v4905_v7 = vrot.slane %v426_v61, %v5478_v60 }
  0x54   : > { %899 = vmatpush1.bf16.msra.mxu0 %v4731_v19  ;;  %942 = vmatpush1.bf16.msra.mxu1 %v4733_v20  ;;  %v435_v10 = vrot.slane %v426_v61, %v5480_v0  ;;  %v4911_v11 = vrot.slane %v426_v61, %v5479_v1 }
  0x55   : > { %900 = vmatprep.subr.bf16.mxu0 %v4735_v21  ;;  %943 = vmatprep.subr.bf16.mxu1 %v4739_v22 }
  0x56   : > { %554 = vmatprep.mubr.bf16.mxu0 %v5482_v5  ;;  %627 = vmatprep.mubr.bf16.mxu1 %v5482_v5 }
  0x58   : > { %901 = vmatpush1.bf16.msra.mxu0 %v4743_v23  ;;  %944 = vmatpush1.bf16.msra.mxu1 %v4747_v24 }
  0x59   : > { %902 = vmatprep.subr.bf16.mxu0 %v4749_v25  ;;  %945 = vmatprep.subr.bf16.mxu1 %v4753_v26 }
  0x5b   : > { %3593 = vmatmul.mubr.msk.bf16.gmra.mxu0 %vm486_vm1, %v4001_v27  ;;  %3598 = vmatmul.mubr.msk.bf16.gmra.mxu1 %vm486_vm1, %v4001_v27 }
  0x5c   : > { %903 = vmatpush1.bf16.msra.mxu0 %v4758_v28  ;;  %946 = vmatpush1.bf16.msra.mxu1 %v4762_v29 }
  0x5d   : > { %904 = vmatprep.subr.bf16.mxu0 %v4766_v30  ;;  %947 = vmatprep.subr.bf16.mxu1 %v4768_v31 }
  0x5e   : > { %564 = vmatprep.mubr.bf16.mxu0 %v5482_v5  ;;  %637 = vmatprep.mubr.bf16.mxu1 %v5482_v5 }
  0x60   : > { %905 = vmatpush1.bf16.msra.mxu0 %v4774_v32  ;;  %948 = vmatpush1.bf16.msra.mxu1 %v4776_v33 }
  0x61   : > { %906 = vmatprep.subr.bf16.mxu0 %v4780_v34  ;;  %949 = vmatprep.subr.bf16.mxu1 %v4782_v35 }
  0x63   : > { %3594 = vmatmul.mubr.msk.bf16.gmra.mxu0 %vm486_vm1, %v4014_v36  ;;  %3599 = vmatmul.mubr.msk.bf16.gmra.mxu1 %vm486_vm1, %v4014_v36 }
  0x64   : > { %907 = vmatpush1.bf16.msra.mxu0 %v4787_v37  ;;  %950 = vmatpush1.bf16.msra.mxu1 %v4789_v38 }
  0x65   : > { %908 = vmatprep.subr.bf16.mxu0 %v4791_v39  ;;  %951 = vmatprep.subr.bf16.mxu1 %v4793_v40 }
  0x66   : > { %574 = vmatprep.mubr.bf16.mxu0 %v5482_v5  ;;  %647 = vmatprep.mubr.bf16.mxu1 %v5482_v5 }
  0x68   : > { %909 = vmatpush1.bf16.msra.mxu0 %v4799_v41  ;;  %952 = vmatpush1.bf16.msra.mxu1 %v4801_v42 }
  0x69   : > { %910 = vmatprep.subr.bf16.mxu0 %v4805_v43  ;;  %953 = vmatprep.subr.bf16.mxu1 %v4807_v44 }
  0x6b   : > { %3595 = vmatmul.mubr.msk.bf16.gmra.mxu0 %vm486_vm1, %v4027_v45  ;;  %3600 = vmatmul.mubr.msk.bf16.gmra.mxu1 %vm486_vm1, %v4027_v45 }
  0x6c   : > { %911 = vmatpush1.bf16.msra.mxu0 %v4816_v46  ;;  %954 = vmatpush1.bf16.msra.mxu1 %v4818_v47 }
  0x6d   : > { %912 = vmatprep.subr.bf16.mxu0 %v4820_v48  ;;  %955 = vmatprep.subr.bf16.mxu1 %v4822_v49 }
  0x6e   : > { %930 = vmatprep.mubr.bf16.mxu0 %v5482_v5  ;;  %973 = vmatprep.mubr.bf16.mxu1 %v5482_v5 }
  0x70   : > { %913 = vmatpush1.bf16.msra.mxu0 %v4828_v50  ;;  %956 = vmatpush1.bf16.msra.mxu1 %v4830_v51 }
  0x71   : > { %1253 = vmatprep.subr.bf16.mxu0 %v4726_v12  ;;  %1296 = vmatprep.subr.bf16.mxu1 %v4728_v17 }
  0x73   : > { %931 = vmatmul.mubr.bf16.vlgmr.msra.gmra.mxu0 %v705_v54  ;;  %974 = vmatmul.mubr.bf16.vlgmr.msra.gmra.mxu1 %v705_v54 }
  0x74   : > { %1254 = vmatpush1.bf16.msra.mxu0 %v4731_v19  ;;  %1297 = vmatpush1.bf16.msra.mxu1 %v4733_v20 }
  0x75   : > { %1255 = vmatprep.subr.bf16.mxu0 %v4735_v21  ;;  %1298 = vmatprep.subr.bf16.mxu1 %v4739_v22 }
  0x76   : > { %1285 = vmatprep.mubr.bf16.mxu0 %v5482_v5  ;;  %1328 = vmatprep.mubr.bf16.mxu1 %v5482_v5 }
  0x78   : > { %1256 = vmatpush1.bf16.msra.mxu0 %v4743_v23  ;;  %1299 = vmatpush1.bf16.msra.mxu1 %v4747_v24 }
  0x79   : > { %1257 = vmatprep.subr.bf16.mxu0 %v4749_v25  ;;  %1300 = vmatprep.subr.bf16.mxu1 %v4753_v26 }
  0x7c   : > { %1258 = vmatpush1.bf16.msra.mxu0 %v4758_v28  ;;  %1301 = vmatpush1.bf16.msra.mxu1 %v4762_v29 }
  0x7d   : > { %1259 = vmatprep.subr.bf16.mxu0 %v4766_v30  ;;  %1302 = vmatprep.subr.bf16.mxu1 %v4768_v31 }
  0x80   : > { %1260 = vmatpush1.bf16.msra.mxu0 %v4774_v32  ;;  %1303 = vmatpush1.bf16.msra.mxu1 %v4776_v33 }
  0x81   : > { %1261 = vmatprep.subr.bf16.mxu0 %v4780_v34  ;;  %1304 = vmatprep.subr.bf16.mxu1 %v4782_v35 }
  0x84   : > { %1262 = vmatpush1.bf16.msra.mxu0 %v4787_v37  ;;  %1305 = vmatpush1.bf16.msra.mxu1 %v4789_v38 }
  0x85   : > { %1263 = vmatprep.subr.bf16.mxu0 %v4791_v39  ;;  %1306 = vmatprep.subr.bf16.mxu1 %v4793_v40 }
  0x88   : > { %1264 = vmatpush1.bf16.msra.mxu0 %v4799_v41  ;;  %1307 = vmatpush1.bf16.msra.mxu1 %v4801_v42 }
  0x89   : > { %1265 = vmatprep.subr.bf16.mxu0 %v4805_v43  ;;  %1308 = vmatprep.subr.bf16.mxu1 %v4807_v44 }
  0x8c   : > { %1266 = vmatpush1.bf16.msra.mxu0 %v4816_v46  ;;  %1309 = vmatpush1.bf16.msra.mxu1 %v4818_v47 }
  0x8d   : > { %1267 = vmatprep.subr.bf16.mxu0 %v4820_v48  ;;  %1310 = vmatprep.subr.bf16.mxu1 %v4822_v49 }
  0x90   : > { %1268 = vmatpush1.bf16.msra.mxu0 %v4828_v50  ;;  %1311 = vmatpush1.bf16.msra.mxu1 %v4830_v51 }
  0x91   : > { %1609 = vmatprep.subr.bf16.mxu0 %v4726_v12  ;;  %1652 = vmatprep.subr.bf16.mxu1 %v4728_v17 }
 0x113   : > { %v4878_v55 = vpop.f32.mrf.mxu0  ;;  %v4880_v56 = vpop.f32.mrf.mxu1 }
 0x115   : > { %v4882_v57 = vpop.f32.mrf.mxu0  ;;  %v4884_v58 = vpop.f32.mrf.mxu1 }
 0x117   : > { %v4891_v62 = vpop.f32.mrf.mxu0  ;;  %v4893_v63 = vpop.f32.mrf.mxu1 }
 0x119   : > { %v4897_v2 = vpop.f32.mrf.mxu0  ;;  %v4899_v3 = vpop.f32.mrf.mxu1 }
 0x11b   : > { %v556_v8 = vpop.f32.mrf.mxu0  ;;  %v629_v9 = vpop.f32.mrf.mxu1 }
 0x11c   : > { %v4913_v12 = vadd.f32 %v556_v8, %v431_v4  ;;  %v4916_v13 = vadd.f32 %v629_v9, %v4905_v7 }
 0x11d   : > { %v558_v14 = vpop.f32.mrf.mxu0  ;;  %v631_v15 = vpop.f32.mrf.mxu1 }
 0x11e   : > { %v4918_v16 = vadd.f32 %v558_v14, %v435_v10  ;;  %v4921_v17 = vadd.f32 %v631_v15, %v4911_v11 }
 0x11f   : > { %v560_v18 = vpop.f32.mrf.mxu0  ;;  %v633_v27 = vpop.f32.mrf.mxu1 }
 0x120   : > { %v4923_v36 = vadd.f32 %v560_v18, %v431_v4  ;;  %v4926_v45 = vadd.f32 %v633_v27, %v4905_v7 }
 0x121   : > { %v562_v52 = vpop.f32.mrf.mxu0  ;;  %v635_v53 = vpop.f32.mrf.mxu1 }
 0x122   : > { %5491 = vst [vmem:[#allocation16_spill] sm:$0xff] %v4926_v45  ;;  %v4928_v54 = vadd.f32 %v562_v52, %v435_v10  ;;  %v4931_v61 = vadd.f32 %v635_v53, %v4911_v11  ;;  %v553_v45 = vadd.f32 %v4897_v2, %v435_v10 }
 0x123   : > { %v566_v8 = vpop.f32.mrf.mxu0  ;;  %v639_v9 = vpop.f32.mrf.mxu1 }
 0x124   : > { %5492 = vst [vmem:[#allocation17_spill] sm:$0xff] %v4931_v61  ;;  %v4933_v14 = vadd.f32 %v566_v8, %v431_v4  ;;  %v4936_v15 = vadd.f32 %v639_v9, %v4905_v7 }
 0x125   : > { %v568_v60 = vpop.f32.mrf.mxu0  ;;  %v641_v18 = vpop.f32.mrf.mxu1 }
 0x126   : > { %5493 = vst [vmem:[#allocation18_spill] sm:$0xff] %v4933_v14  ;;  %5494 = vst [vmem:[#allocation19_spill] sm:$0xff] %v4936_v15  ;;  %v4938_v1 = vadd.f32 %v568_v60, %v435_v10  ;;  %v4941_v27 = vadd.f32 %v641_v18, %v4911_v11 }
 0x127   : > { %v570_v0 = vpop.f32.mrf.mxu0  ;;  %v643_v52 = vpop.f32.mrf.mxu1 }
 0x128   : > { %5495 = vst [vmem:[#allocation20_spill] sm:$0xff] %v4938_v1  ;;  %5496 = vst [vmem:[#allocation21_spill] sm:$0xff] %v4941_v27  ;;  %v4943_v59 = vadd.f32 %v570_v0, %v431_v4  ;;  %v4946_v53 = vadd.f32 %v643_v52, %v4905_v7 }
 0x129   : > { %v572_v5 = vpop.f32.mrf.mxu0  ;;  %v645_v8 = vpop.f32.mrf.mxu1 }
 0x12a   : > { %5497 = vst [vmem:[#allocation22_spill] sm:$0xff] %v4943_v59  ;;  %5498 = vst [vmem:[#allocation23_spill] sm:$0xff] %v4946_v53  ;;  %v4948_v6 = vadd.f32 %v572_v5, %v435_v10  ;;  %v4951_v9 = vadd.f32 %v645_v8, %v4911_v11 }
 0x12b   : > { %v576_v15 = vpop.f32.mrf.mxu0  ;;  %v649_v60 = vpop.f32.mrf.mxu1 }
 0x12c   : > { %5499 = vst [vmem:[#allocation24_spill] sm:$0xff] %v4948_v6  ;;  %5500 = vst [vmem:[#allocation25_spill] sm:$0xff] %v4951_v9  ;;  %v4953_v1 = vadd.f32 %v576_v15, %v431_v4  ;;  %v4956_v18 = vadd.f32 %v649_v60, %v4905_v7 }
 0x12d   : > { %v578_v27 = vpop.f32.mrf.mxu0  ;;  %v651_v0 = vpop.f32.mrf.mxu1 }
 0x12e   : > { %5501 = vst [vmem:[#allocation26_spill] sm:$0xff] %v4953_v1  ;;  %5502 = vst [vmem:[#allocation27_spill] sm:$0xff] %v4956_v18  ;;  %v4958_v59 = vadd.f32 %v578_v27, %v435_v10  ;;  %v4961_v52 = vadd.f32 %v651_v0, %v4911_v11  ;;  %v547_v1 = vadd.f32 %v4878_v55, %v431_v4 }
 0x12f   : > { %v580_v53 = vpop.f32.mrf.mxu0  ;;  %v653_v5 = vpop.f32.mrf.mxu1  ;;  %v549_v0 = vadd.f32 %v4882_v57, %v435_v10 }
 0x130   : > { %5503 = vst [vmem:[#allocation28_spill] sm:$0xff] %v4958_v59  ;;  %5504 = vst [vmem:[#allocation29_spill] sm:$0xff] %v4961_v52  ;;  %v4963_v6 = vadd.f32 %v580_v53, %v431_v4  ;;  %v4966_v8 = vadd.f32 %v653_v5, %v4905_v7  ;;  %v551_v53 = vadd.f32 %v4891_v62, %v431_v4 }
 0x131   : > { %v582_v9 = vpop.f32.mrf.mxu0  ;;  %v655_v15 = vpop.f32.mrf.mxu1  ;;  %v622_v62 = vadd.f32 %v4884_v58, %v4911_v11 }
 0x132   : > { %5505 = vst [vmem:[#allocation30_spill] sm:$0xff] %v4963_v6  ;;  %5506 = vst [vmem:[#allocation31_spill] sm:$0xff] %v4966_v8  ;;  %v4969_v60 = vadd.f32 %v582_v9, %v435_v10  ;;  %v4972_v18 = vadd.f32 %v655_v15, %v4911_v11 }
 0x133   : > { %v932_v27 = vpop.f32.mrf.mxu0  ;;  %v975_v59 = vpop.f32.mrf.mxu1 }
 0x134   : > { %5507 = vst [vmem:[#allocation32_spill] sm:$0xff] %v4969_v60  ;;  %5508 = vst [vmem:[#allocation33_spill] sm:$0xff] %v4972_v18  ;;  %v984_v52 = vadd.f32 %v932_v27, %v547_v1 }
 0x135   : > { %v934_v14 = vpop.f32.mrf.mxu0  ;;  %v977_v9 = vpop.f32.mrf.mxu1 }
 0x136   : > { %v3633_v6 = vmul.f32 -1.442695, %v984_v52  ;;  %v985_v5 = vadd.f32 %v934_v14, %v549_v0  ;;  %v620_v14 = vadd.f32 %v4880_v56, %v4905_v7  ;;  %v987_v2 = vadd.f32 %v977_v9, %v622_v62 }
 0x137   : > { %v936_v8 = vpop.f32.mrf.mxu0  ;;  %v979_v57 = vpop.f32.mrf.mxu1 }
 0x138   : > { %4188 = vpow2.f32 %v3633_v6  ;;  %v3635_v55 = vmul.f32 -1.442695, %v985_v5  ;;  %v988_v60 = vadd.f32 %v936_v8, %v551_v53  ;;  %v626_v6 = vadd.f32 %v4899_v3, %v4911_v11 }
 0x139   : > { %v938_v61 = vpop.f32.mrf.mxu0  ;;  %v981_v4 = vpop.f32.mrf.mxu1  ;;  %v986_v10 = vadd.f32 %v975_v59, %v620_v14  ;;  %v693_v14 = vld [vmem:[#allocation6] sm:$0xff] }
 0x13a   : > { %4190 = vpow2.f32 %v3635_v55  ;;  %v3634_v15 = vmul.f32 -1.442695, %v988_v60  ;;  %v989_v18 = vadd.f32 %v938_v61, %v553_v45  ;;  %v991_v52 = vadd.f32 %v981_v4, %v626_v6  ;;  %v692_v55 = vld [vmem:[#allocation6 + $0x8] sm:$0xff] }
 0x13b   : > { %v3637_v60 = vmul.f32 -1.442695, %v987_v2 }
 0x13c   : > { %4192 = vpow2.f32 %v3634_v15  ;;  %v3636_v1 = vmul.f32 -1.442695, %v989_v18  ;;  %v624_v18 = vadd.f32 %v4893_v63, %v4905_v7  ;;  %v3638_v27 = vmul.f32 -1.442695, %v991_v52 }
 0x13e   : > { %4194 = vpow2.f32 %v3636_v1  ;;  %v990_v56 = vadd.f32 %v979_v57, %v624_v18 }
 0x13f   : > { %4196 = vtanh.f32 %v986_v10 }
 0x145   : > { %v4189_v8 = vpop.eup %4188 }
 0x146   : > { %v998_v45 = vadd.f32 1.0, %v4189_v8 }
 0x147   : > { %v4191_v61 = vpop.eup %4190 }
 0x148   : > { %4198 = vrcp.f32 %v998_v45  ;;  %v1010_v58 = vadd.f32 1.0, %v4191_v61 }
 0x149   : > { %v4193_v0 = vpop.eup %4192  ;;  %4200 = vpow2.f32 %v3637_v60 }
 0x14a   : > { %4202 = vrcp.f32 %v1010_v58  ;;  %v999_v53 = vadd.f32 1.0, %v4193_v0 }
 0x14b   : > { %v4195_v3 = vpop.eup %4194  ;;  %4204 = vpow2.f32 %v3638_v27 }
 0x14c   : > { %4206 = vrcp.f32 %v999_v53  ;;  %v1011_v59 = vadd.f32 1.0, %v4195_v3  ;;  %v4197_v11 = vpop.eup %4196  ;;  %v5509_v53 = vmov 0  }
 0x14d   : > { %4208 = vtanh.f32 %v990_v56 }
 0x14e   : > { %4210 = vrcp.f32 %v1011_v59 }
 0x155   : > { %v4199_v5 = vpop.eup %4198 }
 0x156   : > { %v4201_v9 = vpop.eup %4200  ;;  %v1032_v15 = vmul.f32 %v4199_v5, %v4197_v11 }
 0x157   : > { %v4203_v63 = vpop.eup %4202  ;;  %v1024_v4 = vadd.f32 1.0, %v4201_v9 }
 0x158   : > { %v4205_v7 = vpop.eup %4204  ;;  %v1030_v1 = vmul.f32 %v4203_v63, %v692_v55 }
 0x159   : > { %v4207_v62 = vpop.eup %4206  ;;  %v1025_v10 = vadd.f32 1.0, %v4205_v7  ;;  %4212 = vrcp.f32 %v1024_v4 }
 0x15a   : > { %v4209_v57 = vpop.eup %4208  ;;  %v4985_v6 = vadd.f32 %v1032_v15, %v1030_v1 }
 0x15b   : > { %v4211_v2 = vpop.eup %4210  ;;  %v1033_v52 = vmul.f32 %v4209_v57, %v4207_v62 }
 0x15c   : > { %v1031_v8 = vmul.f32 %v4211_v2, %v693_v14  ;;  %4214 = vtanh.f32 %v4985_v6 }
 0x15d   : > { %4216 = vrcp.f32 %v1025_v10 }
 0x15e   : > { %v4987_v60 = vadd.f32 %v1033_v52, %v1031_v8 }
 0x160   : > { %4218 = vtanh.f32 %v4987_v60 }
 0x166   : > { %v4213_v45 = vpop.eup %4212 }
 0x169   : > { %v4215_v61 = vpop.eup %4214 }
 0x16a   : > { %v4217_v18 = vpop.eup %4216  ;;  %v1038_v58 = vmul.f32 %v4215_v61, %v4213_v45  ;;  %v4045_v45 = vld [vmem:[#allocation8 + $0xec] ss:$16 sps:$4 sm:$0xff]   ;;  %v4040_v61 = vld [vmem:[#allocation8 + $0xe0] ss:$16 sps:$4 sm:$0xff]  }
 0x16d   : > { %v4219_v27 = vpop.eup %4218 }
 0x16e   : > { %v1039_v0 = vmul.f32 %v4219_v27, %v4217_v18  ;;  %v4043_v18 = vld [vmem:[#allocation8 + $0xe8] ss:$16 sps:$4 sm:$0xff]   ;;  %v4048_v27 = vld [vmem:[#allocation8 + $0xc4] ss:$16 sps:$4 sm:$0xff]  }
 0x170   : > { %v1040_v56 = vpack.c.bf16 %v1039_v0, %v1038_v58  ;;  %v4051_v58 = vld [vmem:[#allocation8 + $0xcc] ss:$16 sps:$4 sm:$0xff]   ;;  %v4046_v0 = vld [vmem:[#allocation8 + $0xc0] ss:$16 sps:$4 sm:$0xff]  }
 0x172   : > { %3880 = vst [vmem:[#allocation3] sm:$0xff] %v1040_v56   ;;  %1286 = vmatmul.mubr.bf16.vlgmr.msra.gmra.mxu0 %v1040_v56  ;;  %1329 = vmatmul.mubr.bf16.vlgmr.msra.gmra.mxu1 %v1040_v56  ;;  %v4049_v56 = vld [vmem:[#allocation8 + $0xc8] ss:$16 sps:$4 sm:$0xff]  }
 0x173   : > { %1610 = vmatpush1.bf16.msra.mxu0 %v4731_v19  ;;  %1653 = vmatpush1.bf16.msra.mxu1 %v4733_v20 }
 0x174   : > { %1611 = vmatprep.subr.bf16.mxu0 %v4735_v21  ;;  %1654 = vmatprep.subr.bf16.mxu1 %v4739_v22 }
 0x175   : > { %1641 = vmatprep.mubr.bf16.mxu0 %v5509_v53  ;;  %1684 = vmatprep.mubr.bf16.mxu1 %v5509_v53 }
 0x177   : > { %1612 = vmatpush1.bf16.msra.mxu0 %v4743_v23  ;;  %1655 = vmatpush1.bf16.msra.mxu1 %v4747_v24 }
 0x178   : > { %1613 = vmatprep.subr.bf16.mxu0 %v4749_v25  ;;  %1656 = vmatprep.subr.bf16.mxu1 %v4753_v26 }
 0x17b   : > { %1614 = vmatpush1.bf16.msra.mxu0 %v4758_v28  ;;  %1657 = vmatpush1.bf16.msra.mxu1 %v4762_v29 }
 0x17c   : > { %1615 = vmatprep.subr.bf16.mxu0 %v4766_v30  ;;  %1658 = vmatprep.subr.bf16.mxu1 %v4768_v31 }
 0x17f   : > { %1616 = vmatpush1.bf16.msra.mxu0 %v4774_v32  ;;  %1659 = vmatpush1.bf16.msra.mxu1 %v4776_v33 }
 0x180   : > { %1617 = vmatprep.subr.bf16.mxu0 %v4780_v34  ;;  %1660 = vmatprep.subr.bf16.mxu1 %v4782_v35 }
 0x183   : > { %1618 = vmatpush1.bf16.msra.mxu0 %v4787_v37  ;;  %1661 = vmatpush1.bf16.msra.mxu1 %v4789_v38 }
 0x184   : > { %1619 = vmatprep.subr.bf16.mxu0 %v4791_v39  ;;  %1662 = vmatprep.subr.bf16.mxu1 %v4793_v40  ;;  %v5510_v40 = vld [vmem:[#allocation17_spill] sm:$0xff] }
 0x187   : > { %1620 = vmatpush1.bf16.msra.mxu0 %v4799_v41  ;;  %1663 = vmatpush1.bf16.msra.mxu1 %v4801_v42 }
 0x188   : > { %1621 = vmatprep.subr.bf16.mxu0 %v4805_v43  ;;  %1664 = vmatprep.subr.bf16.mxu1 %v4807_v44  ;;  %v5511_v43 = vld [vmem:[#allocation16_spill] sm:$0xff] }
 0x18b   : > { %1622 = vmatpush1.bf16.msra.mxu0 %v4816_v46  ;;  %1665 = vmatpush1.bf16.msra.mxu1 %v4818_v47 }
 0x18c   : > { %1623 = vmatprep.subr.bf16.mxu0 %v4820_v48  ;;  %1666 = vmatprep.subr.bf16.mxu1 %v4822_v49 }
 0x18f   : > { %1624 = vmatpush1.bf16.msra.mxu0 %v4828_v50  ;;  %1667 = vmatpush1.bf16.msra.mxu1 %v4830_v51 }
 0x190   : > { %2008 = vmatprep.subr.bf16.mxu1 %v4045_v45  ;;  %v5519_v45 = vld [vmem:[#allocation23_spill] sm:$0xff] }
 0x232   : > { %v1287_v19 = vpop.f32.mrf.mxu0  ;;  %v1330_v21 = vpop.f32.mrf.mxu1 }
 0x233   : > { %v1339_v20 = vadd.f32 %v1287_v19, %v4913_v12  ;;  %v1341_v38 = vadd.f32 %v1330_v21, %v4916_v13  ;;  %v4054_v19 = vld [vmem:[#allocation8 + $0xa4] ss:$16 sps:$4 sm:$0xff]   ;;  %v4052_v21 = vld [vmem:[#allocation8 + $0xa0] ss:$16 sps:$4 sm:$0xff]  }
 0x234   : > { %v1289_v22 = vpop.f32.mrf.mxu0  ;;  %v1332_v28 = vpop.f32.mrf.mxu1 }
 0x235   : > { %v3673_v23 = vmul.f32 -1.442695, %v1339_v20  ;;  %v1340_v24 = vadd.f32 %v1289_v22, %v4918_v16  ;;  %v1342_v35 = vadd.f32 %v1332_v28, %v4921_v17  ;;  %v4057_v20 = vld [vmem:[#allocation8 + $0xac] ss:$16 sps:$4 sm:$0xff]   ;;  %v4055_v22 = vld [vmem:[#allocation8 + $0xa8] ss:$16 sps:$4 sm:$0xff]  }
 0x236   : > { %v1291_v25 = vpop.f32.mrf.mxu0  ;;  %v1334_v33 = vpop.f32.mrf.mxu1  ;;  %v4066_v28 = vld [vmem:[#allocation8 + $0x64] ss:$16 sps:$4 sm:$0xff]  }
 0x237   : > { %4220 = vpow2.f32 %v3673_v23  ;;  %v3675_v26 = vmul.f32 -1.442695, %v1340_v24  ;;  %v1343_v29 = vadd.f32 %v1291_v25, %v4923_v36  ;;  %v3677_v39 = vmul.f32 -1.442695, %v1342_v35  ;;  %v4058_v23 = vld [vmem:[#allocation8 + $0x80] ss:$16 sps:$4 sm:$0xff]  }
 0x238   : > { %v1293_v30 = vpop.f32.mrf.mxu0  ;;  %v1336_v37 = vpop.f32.mrf.mxu1  ;;  %v1345_v44 = vadd.f32 %v1334_v33, %v5511_v43  ;;  %v4060_v24 = vld [vmem:[#allocation8 + $0x84] ss:$16 sps:$4 sm:$0xff]   ;;  %v4061_v25 = vld [vmem:[#allocation8 + $0x88] ss:$16 sps:$4 sm:$0xff]   ;;  %v4075_v33 = vld [vmem:[#allocation8 + $0x4c] ss:$16 sps:$4 sm:$0xff]  }
 0x239   : > { %4222 = vpow2.f32 %v3675_v26  ;;  %v3674_v31 = vmul.f32 -1.442695, %v1343_v29  ;;  %v1344_v32 = vadd.f32 %v1293_v30, %v4928_v54  ;;  %v1346_v41 = vadd.f32 %v1336_v37, %v5510_v40  ;;  %v4063_v26 = vld [vmem:[#allocation8 + $0x8c] ss:$16 sps:$4 sm:$0xff]   ;;  %v4064_v30 = vld [vmem:[#allocation8 + $0x60] ss:$16 sps:$4 sm:$0xff]  }
 0x23a   : > { %v4069_v29 = vld [vmem:[#allocation8 + $0x6c] ss:$16 sps:$4 sm:$0xff]   ;;  %v4073_v35 = vld [vmem:[#allocation8 + $0x48] ss:$16 sps:$4 sm:$0xff]   ;;  %v4078_v37 = vld [vmem:[#allocation8 + $0x24] ss:$16 sps:$4 sm:$0xff]  }
 0x23b   : > { %4224 = vpow2.f32 %v3674_v31  ;;  %v3676_v34 = vmul.f32 -1.442695, %v1344_v32  ;;  %v3678_v48 = vmul.f32 -1.442695, %v1346_v41  ;;  %v4067_v31 = vld [vmem:[#allocation8 + $0x68] ss:$16 sps:$4 sm:$0xff]  }
 0x23c   : > { %v4072_v32 = vld [vmem:[#allocation8 + $0x44] ss:$16 sps:$4 sm:$0xff]   ;;  %v4079_v40 = vld [vmem:[#allocation8 + $0x28] ss:$16 sps:$4 sm:$0xff]   ;;  %v4082_v43 = vld [vmem:[#allocation8] ss:$16 sps:$4 sm:$0xff]  }
 0x23d   : > { %4226 = vpow2.f32 %v3676_v34  ;;  %v4070_v34 = vld [vmem:[#allocation8 + $0x40] ss:$16 sps:$4 sm:$0xff]   ;;  %v4084_v41 = vld [vmem:[#allocation8 + $0x4] ss:$16 sps:$4 sm:$0xff]  }
 0x23e   : > { %4228 = vtanh.f32 %v1341_v38  ;;  %v4081_v38 = vld [vmem:[#allocation8 + $0x2c] ss:$16 sps:$4 sm:$0xff]  }
 0x23f   : > { %4230 = vpow2.f32 %v3677_v39  ;;  %v4076_v39 = vld [vmem:[#allocation8 + $0x20] ss:$16 sps:$4 sm:$0xff]  }
 0x244   : > { %v4221_v42 = vpop.eup %4220 }
 0x245   : > { %v1353_v46 = vadd.f32 1.0, %v4221_v42  ;;  %v4087_v42 = vld [vmem:[#allocation8 + $0xc] ss:$16 sps:$4 sm:$0xff]  }
 0x246   : > { %v4223_v47 = vpop.eup %4222 }
 0x247   : > { %4232 = vrcp.f32 %v1353_v46  ;;  %v1365_v49 = vadd.f32 1.0, %v4223_v47  ;;  %v4090_v46 = vld [vmem:[#allocation10 + $0xe4] ss:$16 sps:$4 sm:$0xff]   ;;  %v4093_v47 = vld [vmem:[#allocation10 + $0xec] ss:$16 sps:$4 sm:$0xff]  }
 0x248   : > { %v4225_v50 = vpop.eup %4224  ;;  %4234 = vtanh.f32 %v1345_v44  ;;  %v4085_v44 = vld [vmem:[#allocation8 + $0x8] ss:$16 sps:$4 sm:$0xff]  }
 0x249   : > { %4236 = vrcp.f32 %v1365_v49  ;;  %v1354_v51 = vadd.f32 1.0, %v4225_v50  ;;  %v5512_v49 = vld [vmem:[#allocation18_spill] sm:$0xff] }
 0x24a   : > { %v4227_v12 = vpop.eup %4226  ;;  %4238 = vpow2.f32 %v3678_v48 }
 0x24b   : > { %4240 = vrcp.f32 %v1354_v51  ;;  %v1366_v13 = vadd.f32 1.0, %v4227_v12  ;;  %v4229_v16 = vpop.eup %4228 }
 0x24c   : > { %v4231_v17 = vpop.eup %4230 }
 0x24d   : > { %4242 = vrcp.f32 %v1366_v13  ;;  %v1379_v9 = vadd.f32 1.0, %v4231_v17 }
 0x24f   : > { %4244 = vrcp.f32 %v1379_v9  ;;  %v5515_v9 = vld [vmem:[#allocation24_spill] sm:$0xff] }
 0x254   : > { %v4233_v36 = vpop.eup %4232 }
 0x255   : > { %v4235_v54 = vpop.eup %4234  ;;  %v1387_v3 = vmul.f32 %v4233_v36, %v4229_v16  ;;  %v5513_v16 = vld [vmem:[#allocation20_spill] sm:$0xff] }
 0x256   : > { %v4237_v59 = vpop.eup %4236 }
 0x257   : > { %v4239_v11 = vpop.eup %4238  ;;  %v1385_v5 = vmul.f32 %v4237_v59, %v4985_v6  ;;  %v5514_v59 = vld [vmem:[#allocation22_spill] sm:$0xff] }
 0x258   : > { %v4241_v55 = vpop.eup %4240  ;;  %v1380_v1 = vadd.f32 1.0, %v4239_v11 }
 0x259   : > { %v5032_v63 = vadd.f32 %v1387_v3, %v1385_v5  ;;  %v1388_v7 = vmul.f32 %v4241_v55, %v4235_v54 }
 0x25a   : > { %v4243_v15 = vpop.eup %4242 }
 0x25b   : > { %v1386_v62 = vmul.f32 %v4243_v15, %v4987_v60  ;;  %4246 = vtanh.f32 %v5032_v63  ;;  %v4042_v60 = vld [vmem:[#allocation8 + $0xe4] ss:$16 sps:$4 sm:$0xff]  }
 0x25c   : > { %4248 = vrcp.f32 %v1380_v1  ;;  %v4245_v14 = vpop.eup %4244  ;;  %1965 = vmatprep.subr.bf16.mxu0 %v4042_v60 }
 0x25d   : > { %v5035_v4 = vadd.f32 %v1388_v7, %v1386_v62  ;;  %v5516_v62 = vld [vmem:[#allocation21_spill] sm:$0xff] }
 0x25f   : > { %4250 = vtanh.f32 %v5035_v4 }
 0x268   : > { %v4247_v57 = vpop.eup %4246 }
 0x269   : > { %v4249_v6 = vpop.eup %4248  ;;  %v1393_v10 = vmul.f32 %v4247_v57, %v4245_v14 }
 0x26c   : > { %v4251_v2 = vpop.eup %4250 }
 0x26d   : > { %v1394_v52 = vmul.f32 %v4251_v2, %v4249_v6  ;;  %v5517_v6 = vld [vmem:[#allocation19_spill] sm:$0xff] }
 0x26f   : > { %v1395_v8 = vpack.c.bf16 %v1394_v52, %v1393_v10  ;;  %v5518_v52 = vld [vmem:[#allocation25_spill] sm:$0xff] }
 0x271   : > { %3885 = vst [vmem:[#allocation3 + $0x8] sm:$0xff] %v1395_v8   ;;  %1642 = vmatmul.mubr.bf16.vlgmr.msra.gmra.mxu0 %v1395_v8  ;;  %1685 = vmatmul.mubr.bf16.vlgmr.msra.gmra.mxu1 %v1395_v8 }
 0x272   : > { %1997 = vmatprep.mubr.bf16.mxu0 %v5509_v53  ;;  %2040 = vmatprep.mubr.bf16.mxu1 %v5509_v53 }
 0x273   : > { %1966 = vmatpush1.bf16.msra.mxu0 %v4040_v61  ;;  %2009 = vmatpush1.bf16.msra.mxu1 %v4043_v18 }
 0x274   : > { %1967 = vmatprep.subr.bf16.mxu0 %v4048_v27  ;;  %2010 = vmatprep.subr.bf16.mxu1 %v4051_v58 }
 0x277   : > { %1968 = vmatpush1.bf16.msra.mxu0 %v4046_v0  ;;  %2011 = vmatpush1.bf16.msra.mxu1 %v4049_v56 }
 0x278   : > { %1969 = vmatprep.subr.bf16.mxu0 %v4054_v19  ;;  %2012 = vmatprep.subr.bf16.mxu1 %v4057_v20 }
 0x27b   : > { %1970 = vmatpush1.bf16.msra.mxu0 %v4052_v21  ;;  %2013 = vmatpush1.bf16.msra.mxu1 %v4055_v22 }
 0x27c   : > { %1971 = vmatprep.subr.bf16.mxu0 %v4060_v24  ;;  %2014 = vmatprep.subr.bf16.mxu1 %v4063_v26 }
 0x27f   : > { %1972 = vmatpush1.bf16.msra.mxu0 %v4058_v23  ;;  %2015 = vmatpush1.bf16.msra.mxu1 %v4061_v25 }
 0x280   : > { %1973 = vmatprep.subr.bf16.mxu0 %v4066_v28  ;;  %2016 = vmatprep.subr.bf16.mxu1 %v4069_v29 }
 0x283   : > { %1974 = vmatpush1.bf16.msra.mxu0 %v4064_v30  ;;  %2017 = vmatpush1.bf16.msra.mxu1 %v4067_v31 }
 0x284   : > { %1975 = vmatprep.subr.bf16.mxu0 %v4072_v32  ;;  %2018 = vmatprep.subr.bf16.mxu1 %v4075_v33 }
 0x287   : > { %1976 = vmatpush1.bf16.msra.mxu0 %v4070_v34  ;;  %2019 = vmatpush1.bf16.msra.mxu1 %v4073_v35 }
 0x288   : > { %1977 = vmatprep.subr.bf16.mxu0 %v4078_v37  ;;  %2020 = vmatprep.subr.bf16.mxu1 %v4081_v38 }
 0x28b   : > { %1978 = vmatpush1.bf16.msra.mxu0 %v4076_v39  ;;  %2021 = vmatpush1.bf16.msra.mxu1 %v4079_v40 }
 0x28c   : > { %1979 = vmatprep.subr.bf16.mxu0 %v4084_v41  ;;  %2022 = vmatprep.subr.bf16.mxu1 %v4087_v42 }
 0x28f   : > { %1980 = vmatpush1.bf16.msra.mxu0 %v4082_v43  ;;  %2023 = vmatpush1.bf16.msra.mxu1 %v4085_v44 }
 0x290   : > { %2368 = vmatprep.subr.bf16.mxu0 %v4090_v46  ;;  %2441 = vmatprep.subr.bf16.mxu1 %v4093_v47  ;;  %v4088_v46 = vld [vmem:[#allocation10 + $0xe0] ss:$16 sps:$4 sm:$0xff]   ;;  %v4091_v47 = vld [vmem:[#allocation10 + $0xe8] ss:$16 sps:$4 sm:$0xff]  }
 0x331   : > { %v1643_v48 = vpop.f32.mrf.mxu0  ;;  %v1686_v51 = vpop.f32.mrf.mxu1 }
 0x332   : > { %v1695_v50 = vadd.f32 %v1643_v48, %v5512_v49  ;;  %v1697_v2 = vadd.f32 %v1686_v51, %v5517_v6  ;;  %v4096_v49 = vld [vmem:[#allocation10 + $0xc4] ss:$16 sps:$4 sm:$0xff]   ;;  %v4097_v51 = vld [vmem:[#allocation10 + $0xc8] ss:$16 sps:$4 sm:$0xff]   ;;  %v4124_v6 = vld [vmem:[#allocation10 + $0x20] ss:$16 sps:$4 sm:$0xff]  }
 0x333   : > { %v1645_v12 = vpop.f32.mrf.mxu0  ;;  %v1688_v3 = vpop.f32.mrf.mxu1 }
 0x334   : > { %v3713_v13 = vmul.f32 -1.442695, %v1695_v50  ;;  %v1696_v17 = vadd.f32 %v1645_v12, %v5513_v16  ;;  %v1698_v14 = vadd.f32 %v1688_v3, %v5516_v62  ;;  %v4099_v50 = vld [vmem:[#allocation10 + $0xcc] ss:$16 sps:$4 sm:$0xff]   ;;  %v4102_v12 = vld [vmem:[#allocation10 + $0xa4] ss:$16 sps:$4 sm:$0xff]  }
 0x335   : > { %v1647_v36 = vpop.f32.mrf.mxu0  ;;  %v1690_v15 = vpop.f32.mrf.mxu1  ;;  %v4100_v16 = vld [vmem:[#allocation10 + $0xa0] ss:$16 sps:$4 sm:$0xff]   ;;  %v4121_v62 = vld [vmem:[#allocation10 + $0x48] ss:$16 sps:$4 sm:$0xff]  }
 0x336   : > { %4252 = vpow2.f32 %v3713_v13  ;;  %v3715_v54 = vmul.f32 -1.442695, %v1696_v17  ;;  %v1699_v11 = vadd.f32 %v1647_v36, %v5514_v59  ;;  %v3717_v10 = vmul.f32 -1.442695, %v1698_v14  ;;  %v4105_v13 = vld [vmem:[#allocation10 + $0xac] ss:$16 sps:$4 sm:$0xff]  }
 0x337   : > { %v1649_v5 = vpop.f32.mrf.mxu0  ;;  %v1692_v57 = vpop.f32.mrf.mxu1  ;;  %v1701_v61 = vadd.f32 %v1690_v15, %v5519_v45  ;;  %v4103_v17 = vld [vmem:[#allocation10 + $0xa8] ss:$16 sps:$4 sm:$0xff]   ;;  %v4108_v36 = vld [vmem:[#allocation10 + $0x84] ss:$16 sps:$4 sm:$0xff]   ;;  %v4106_v3 = vld [vmem:[#allocation10 + $0x80] ss:$16 sps:$4 sm:$0xff]  }
 0x338   : > { %4254 = vpow2.f32 %v3715_v54  ;;  %v3714_v55 = vmul.f32 -1.442695, %v1699_v11  ;;  %v1700_v7 = vadd.f32 %v1649_v5, %v5515_v9  ;;  %v1702_v8 = vadd.f32 %v1692_v57, %v5518_v52  ;;  %v4111_v54 = vld [vmem:[#allocation10 + $0x8c] ss:$16 sps:$4 sm:$0xff]   ;;  %v4109_v59 = vld [vmem:[#allocation10 + $0x88] ss:$16 sps:$4 sm:$0xff]  }
 0x339   : > { %v4114_v11 = vld [vmem:[#allocation10 + $0x64] ss:$16 sps:$4 sm:$0xff]   ;;  %v4117_v5 = vld [vmem:[#allocation10 + $0x6c] ss:$16 sps:$4 sm:$0xff]   ;;  %v4115_v9 = vld [vmem:[#allocation10 + $0x68] ss:$16 sps:$4 sm:$0xff]  }
 0x33a   : > { %4256 = vpow2.f32 %v3714_v55  ;;  %v3716_v1 = vmul.f32 -1.442695, %v1700_v7  ;;  %v3718_v58 = vmul.f32 -1.442695, %v1702_v8  ;;  %v4112_v55 = vld [vmem:[#allocation10 + $0x60] ss:$16 sps:$4 sm:$0xff]  }
 0x33b   : > { %v4120_v7 = vld [vmem:[#allocation10 + $0x44] ss:$16 sps:$4 sm:$0xff]   ;;  %v4123_v15 = vld [vmem:[#allocation10 + $0x4c] ss:$16 sps:$4 sm:$0xff]   ;;  %v4130_v8 = vld [vmem:[#allocation10] ss:$16 sps:$4 sm:$0xff]  }
 0x33c   : > { %4258 = vpow2.f32 %v3716_v1  ;;  %v4118_v1 = vld [vmem:[#allocation10 + $0x40] ss:$16 sps:$4 sm:$0xff]   ;;  %v4126_v14 = vld [vmem:[#allocation10 + $0x24] ss:$16 sps:$4 sm:$0xff]   ;;  %v4129_v57 = vld [vmem:[#allocation10 + $0x2c] ss:$16 sps:$4 sm:$0xff]  }
 0x33d   : > { %4260 = vtanh.f32 %v1697_v2  ;;  %v4127_v2 = vld [vmem:[#allocation10 + $0x28] ss:$16 sps:$4 sm:$0xff]   ;;  %v4135_v52 = vld [vmem:[#allocation10 + $0xc] ss:$16 sps:$4 sm:$0xff]   ;;  %v4136_v45 = vld [vmem:[#allocation3] sm:$0xff]  }
 0x33e   : > { %4262 = vpow2.f32 %v3717_v10  ;;  %v4132_v10 = vld [vmem:[#allocation10 + $0x4] ss:$16 sps:$4 sm:$0xff]  }
 0x343   : > { %v4253_v60 = vpop.eup %4252 }
 0x344   : > { %v1709_v18 = vadd.f32 1.0, %v4253_v60  ;;  %v4133_v60 = vld [vmem:[#allocation10 + $0x8] ss:$16 sps:$4 sm:$0xff]  }
 0x345   : > { %v4255_v27 = vpop.eup %4254 }
 0x346   : > { %4264 = vrcp.f32 %v1709_v18  ;;  %v1721_v0 = vadd.f32 1.0, %v4255_v27  ;;  %v5065_v27 = vld [vmem:[#allocation12 + $0xe4] ss:$16 sps:$4 sm:$0xff]  }
 0x347   : > { %v4257_v56 = vpop.eup %4256  ;;  %4266 = vtanh.f32 %v1701_v61  ;;  %v4137_v61 = vld [vmem:[#allocation3 + $0x8] sm:$0xff]  }
 0x348   : > { %4268 = vrcp.f32 %v1721_v0  ;;  %v1710_v19 = vadd.f32 1.0, %v4257_v56  ;;  %v5069_v0 = vld [vmem:[#allocation12 + $0xe0] ss:$16 sps:$4 sm:$0xff]   ;;  %v5071_v56 = vld [vmem:[#allocation12 + $0xe8] ss:$16 sps:$4 sm:$0xff]  }
 0x349   : > { %v4259_v20 = vpop.eup %4258  ;;  %4270 = vpow2.f32 %v3718_v58  ;;  %v5067_v58 = vld [vmem:[#allocation12 + $0xec] ss:$16 sps:$4 sm:$0xff]  }
 0x34a   : > { %4272 = vrcp.f32 %v1710_v19  ;;  %v1722_v21 = vadd.f32 1.0, %v4259_v20  ;;  %v4261_v22 = vpop.eup %4260  ;;  %v5077_v19 = vld [vmem:[#allocation12 + $0xc4] ss:$16 sps:$4 sm:$0xff]   ;;  %v5079_v20 = vld [vmem:[#allocation12 + $0xcc] ss:$16 sps:$4 sm:$0xff]  }
 0x34b   : > { %v4263_v23 = vpop.eup %4262 }
 0x34c   : > { %4274 = vrcp.f32 %v1722_v21  ;;  %v1735_v32 = vadd.f32 1.0, %v4263_v23  ;;  %v5081_v21 = vld [vmem:[#allocation12 + $0xc0] ss:$16 sps:$4 sm:$0xff]   ;;  %v5089_v23 = vld [vmem:[#allocation12 + $0xa4] ss:$16 sps:$4 sm:$0xff]  }
 0x34e   : > { %4276 = vrcp.f32 %v1735_v32  ;;  %v5111_v32 = vld [vmem:[#allocation12 + $0x64] ss:$16 sps:$4 sm:$0xff]  }
 0x353   : > { %v4265_v24 = vpop.eup %4264 }
 0x354   : > { %v4267_v25 = vpop.eup %4266  ;;  %v1743_v26 = vmul.f32 %v4265_v24, %v4261_v22  ;;  %v5083_v22 = vld [vmem:[#allocation12 + $0xc8] ss:$16 sps:$4 sm:$0xff]   ;;  %v5091_v24 = vld [vmem:[#allocation12 + $0xac] ss:$16 sps:$4 sm:$0xff]  }
 0x355   : > { %v4269_v28 = vpop.eup %4268 }
 0x356   : > { %v4271_v29 = vpop.eup %4270  ;;  %v1741_v30 = vmul.f32 %v4269_v28, %v5032_v63  ;;  %v5101_v28 = vld [vmem:[#allocation12 + $0x84] ss:$16 sps:$4 sm:$0xff]  }
 0x357   : > { %v4273_v31 = vpop.eup %4272  ;;  %v1736_v37 = vadd.f32 1.0, %v4271_v29  ;;  %v5103_v29 = vld [vmem:[#allocation12 + $0x8c] ss:$16 sps:$4 sm:$0xff]  }
 0x358   : > { %v5050_v33 = vadd.f32 %v1743_v26, %v1741_v30  ;;  %v1744_v34 = vmul.f32 %v4273_v31, %v4267_v25  ;;  %v5093_v25 = vld [vmem:[#allocation12 + $0xa0] ss:$16 sps:$4 sm:$0xff]   ;;  %v5095_v26 = vld [vmem:[#allocation12 + $0xa8] ss:$16 sps:$4 sm:$0xff]  }
 0x359   : > { %v4275_v35 = vpop.eup %4274  ;;  %v5105_v30 = vld [vmem:[#allocation12 + $0x80] ss:$16 sps:$4 sm:$0xff]   ;;  %v5107_v31 = vld [vmem:[#allocation12 + $0x88] ss:$16 sps:$4 sm:$0xff]  }
 0x35a   : > { %v1742_v38 = vmul.f32 %v4275_v35, %v5035_v4  ;;  %4278 = vtanh.f32 %v5050_v33  ;;  %v4094_v4 = vld [vmem:[#allocation10 + $0xc0] ss:$16 sps:$4 sm:$0xff]  }
 0x35b   : > { %4280 = vrcp.f32 %v1736_v37  ;;  %v4277_v40 = vpop.eup %4276  ;;  %v5117_v35 = vld [vmem:[#allocation12 + $0x60] ss:$16 sps:$4 sm:$0xff]   ;;  %v5119_v37 = vld [vmem:[#allocation12 + $0x68] ss:$16 sps:$4 sm:$0xff]  }
 0x35c   : > { %v5053_v39 = vadd.f32 %v1744_v34, %v1742_v38  ;;  %v5113_v34 = vld [vmem:[#allocation12 + $0x6c] ss:$16 sps:$4 sm:$0xff]   ;;  %v5123_v38 = vld [vmem:[#allocation12 + $0x44] ss:$16 sps:$4 sm:$0xff]  }
 0x35e   : > { %4282 = vtanh.f32 %v5053_v39 }
 0x367   : > { %v4279_v41 = vpop.eup %4278 }
 0x368   : > { %v4281_v63 = vpop.eup %4280  ;;  %v1749_v43 = vmul.f32 %v4279_v41, %v4277_v40  ;;  %v5125_v40 = vld [vmem:[#allocation12 + $0x4c] ss:$16 sps:$4 sm:$0xff]   ;;  %v5129_v41 = vld [vmem:[#allocation12 + $0x40] ss:$16 sps:$4 sm:$0xff]  }
 0x36b   : > { %v4283_v42 = vpop.eup %4282 }
 0x36c   : > { %v1750_v44 = vmul.f32 %v4283_v42, %v4281_v63  ;;  %v5131_v63 = vld [vmem:[#allocation12 + $0x48] ss:$16 sps:$4 sm:$0xff]   ;;  %v5137_v42 = vld [vmem:[#allocation12 + $0x24] ss:$16 sps:$4 sm:$0xff]  }
 0x36e   : > { %v1751_v48 = vpack.c.bf16 %v1750_v44, %v1749_v43  ;;  %v5139_v43 = vld [vmem:[#allocation12 + $0x2c] ss:$16 sps:$4 sm:$0xff]   ;;  %v5141_v44 = vld [vmem:[#allocation12 + $0x20] ss:$16 sps:$4 sm:$0xff]  }
 0x370   : > { %3890 = vst [vmem:[#allocation3 + $0x10] sm:$0xff] %v1751_v48   ;;  %1998 = vmatmul.mubr.bf16.vlgmr.msra.gmra.mxu0 %v1751_v48  ;;  %2041 = vmatmul.mubr.bf16.vlgmr.msra.gmra.mxu1 %v1751_v48  ;;  %v5147_v48 = vld [vmem:[#allocation12 + $0xc] ss:$16 sps:$4 sm:$0xff]  }
 0x371   : > { %2369 = vmatpush1.bf16.msra.mxu0 %v4088_v46  ;;  %2442 = vmatpush1.bf16.msra.mxu1 %v4091_v47  ;;  %v5143_v46 = vld [vmem:[#allocation12 + $0x28] ss:$16 sps:$4 sm:$0xff]   ;;  %v5145_v47 = vld [vmem:[#allocation12 + $0x4] ss:$16 sps:$4 sm:$0xff]  }
 0x372   : > { %2370 = vmatprep.subr.bf16.mxu0 %v4096_v49  ;;  %2443 = vmatprep.subr.bf16.mxu1 %v4099_v50  ;;  %v5153_v49 = vld [vmem:[#allocation12] ss:$16 sps:$4 sm:$0xff]   ;;  %v5155_v50 = vld [vmem:[#allocation12 + $0x8] ss:$16 sps:$4 sm:$0xff]  }
 0x373   : > { %2400 = vmatprep.mubr.bf16.mxu0 %v5509_v53  ;;  %2473 = vmatprep.mubr.bf16.mxu1 %v5509_v53 }
 0x375   : > { %2371 = vmatpush1.bf16.msra.mxu0 %v4094_v4  ;;  %2444 = vmatpush1.bf16.msra.mxu1 %v4097_v51  ;;  %v5520_v51 = vld [vmem:[#allocation26_spill] sm:$0xff] }
 0x376   : > { %2372 = vmatprep.subr.bf16.mxu0 %v4102_v12  ;;  %2445 = vmatprep.subr.bf16.mxu1 %v4105_v13 }
 0x377   : > { %v4138_v18 = vld [vmem:[#allocation3 + $0x10] sm:$0xff]  }
 0x379   : > { %2373 = vmatpush1.bf16.msra.mxu0 %v4100_v16  ;;  %2446 = vmatpush1.bf16.msra.mxu1 %v4103_v17 }
 0x37a   : > { %2374 = vmatprep.subr.bf16.mxu0 %v4108_v36  ;;  %2447 = vmatprep.subr.bf16.mxu1 %v4111_v54  ;;  %v5521_v36 = vld [vmem:[#allocation28_spill] sm:$0xff] }
 0x37d   : > { %2375 = vmatpush1.bf16.msra.mxu0 %v4106_v3  ;;  %2448 = vmatpush1.bf16.msra.mxu1 %v4109_v59 }
 0x37e   : > { %2376 = vmatprep.subr.bf16.mxu0 %v4114_v11  ;;  %2449 = vmatprep.subr.bf16.mxu1 %v4117_v5  ;;  %v5522_v5 = vld [vmem:[#allocation30_spill] sm:$0xff] }
 0x381   : > { %2377 = vmatpush1.bf16.msra.mxu0 %v4112_v55  ;;  %2450 = vmatpush1.bf16.msra.mxu1 %v4115_v9 }
 0x382   : > { %2378 = vmatprep.subr.bf16.mxu0 %v4120_v7  ;;  %2451 = vmatprep.subr.bf16.mxu1 %v4123_v15  ;;  %v5523_v15 = vld [vmem:[#allocation32_spill] sm:$0xff] }
 0x385   : > { %2379 = vmatpush1.bf16.msra.mxu0 %v4118_v1  ;;  %2452 = vmatpush1.bf16.msra.mxu1 %v4121_v62 }
 0x386   : > { %2380 = vmatprep.subr.bf16.mxu0 %v4126_v14  ;;  %2453 = vmatprep.subr.bf16.mxu1 %v4129_v57  ;;  %v5524_v57 = vld [vmem:[#allocation29_spill] sm:$0xff] }
 0x389   : > { %2381 = vmatpush1.bf16.msra.mxu0 %v4124_v6  ;;  %2454 = vmatpush1.bf16.msra.mxu1 %v4127_v2 }
 0x38a   : > { %2382 = vmatprep.subr.bf16.mxu0 %v4132_v10  ;;  %2455 = vmatprep.subr.bf16.mxu1 %v4135_v52  ;;  %v5525_v10 = vld [vmem:[#allocation27_spill] sm:$0xff] }
 0x38d   : > { %2383 = vmatpush1.bf16.msra.mxu0 %v4130_v8  ;;  %2456 = vmatpush1.bf16.msra.mxu1 %v4133_v60  ;;  %v5526_v60 = vld [vmem:[#allocation33_spill] sm:$0xff] }
 0x38e   : > { %2751 = vmatprep.subr.bf16.mxu0 %v5065_v27  ;;  %2794 = vmatprep.subr.bf16.mxu1 %v5067_v58 }
 0x390   : > { %2401 = vmatmul.mubr.bf16.vlgmr.msra.gmra.mxu0 %v4136_v45  ;;  %2474 = vmatmul.mubr.bf16.vlgmr.msra.gmra.mxu1 %v4136_v45 }
 0x391   : > { %2410 = vmatprep.mubr.bf16.mxu0 %v5509_v53  ;;  %2483 = vmatprep.mubr.bf16.mxu1 %v5509_v53 }
 0x392   : > { %2752 = vmatpush1.bf16.msra.mxu0 %v5069_v0  ;;  %2795 = vmatpush1.bf16.msra.mxu1 %v5071_v56 }
 0x393   : > { %2753 = vmatprep.subr.bf16.mxu0 %v5077_v19  ;;  %2796 = vmatprep.subr.bf16.mxu1 %v5079_v20 }
 0x396   : > { %2754 = vmatpush1.bf16.msra.mxu0 %v5081_v21  ;;  %2797 = vmatpush1.bf16.msra.mxu1 %v5083_v22 }
 0x397   : > { %2755 = vmatprep.subr.bf16.mxu0 %v5089_v23  ;;  %2798 = vmatprep.subr.bf16.mxu1 %v5091_v24 }
 0x398   : > { %2411 = vmatmul.mubr.bf16.gmra.mxu0 %v4137_v61  ;;  %2484 = vmatmul.mubr.bf16.gmra.mxu1 %v4137_v61 }
 0x399   : > { %2420 = vmatprep.mubr.bf16.mxu0 %v5509_v53  ;;  %2493 = vmatprep.mubr.bf16.mxu1 %v5509_v53 }
 0x39a   : > { %2756 = vmatpush1.bf16.msra.mxu0 %v5093_v25  ;;  %2799 = vmatpush1.bf16.msra.mxu1 %v5095_v26 }
 0x39b   : > { %2757 = vmatprep.subr.bf16.mxu0 %v5101_v28  ;;  %2800 = vmatprep.subr.bf16.mxu1 %v5103_v29 }
 0x39e   : > { %2758 = vmatpush1.bf16.msra.mxu0 %v5105_v30  ;;  %2801 = vmatpush1.bf16.msra.mxu1 %v5107_v31 }
 0x39f   : > { %2759 = vmatprep.subr.bf16.mxu0 %v5111_v32  ;;  %2802 = vmatprep.subr.bf16.mxu1 %v5113_v34 }
 0x3a0   : > { %2421 = vmatmul.mubr.bf16.gmra.mxu0 %v4138_v18  ;;  %2494 = vmatmul.mubr.bf16.gmra.mxu1 %v4138_v18  ;;  %v5527_v18 = vld [vmem:[#allocation31_spill] sm:$0xff] }
 0x3a1   : > { %2430 = vmatprep.mubr.bf16.mxu0 %v5509_v53  ;;  %2503 = vmatprep.mubr.bf16.mxu1 %v5509_v53 }
 0x3a2   : > { %2760 = vmatpush1.bf16.msra.mxu0 %v5117_v35  ;;  %2803 = vmatpush1.bf16.msra.mxu1 %v5119_v37 }
 0x3a3   : > { %2761 = vmatprep.subr.bf16.mxu0 %v5123_v38  ;;  %2804 = vmatprep.subr.bf16.mxu1 %v5125_v40 }
 0x3a6   : > { %2762 = vmatpush1.bf16.msra.mxu0 %v5129_v41  ;;  %2805 = vmatpush1.bf16.msra.mxu1 %v5131_v63 }
 0x3a7   : > { %2763 = vmatprep.subr.bf16.mxu0 %v5137_v42  ;;  %2806 = vmatprep.subr.bf16.mxu1 %v5139_v43 }
 0x3aa   : > { %2764 = vmatpush1.bf16.msra.mxu0 %v5141_v44  ;;  %2807 = vmatpush1.bf16.msra.mxu1 %v5143_v46 }
 0x3ab   : > { %2765 = vmatprep.subr.bf16.mxu0 %v5145_v47  ;;  %2808 = vmatprep.subr.bf16.mxu1 %v5147_v48 }
 0x3ae   : > { %2766 = vmatpush1.bf16.msra.mxu0 %v5153_v49  ;;  %2809 = vmatpush1.bf16.msra.mxu1 %v5155_v50 }
 0x3af   : > { %2902 = vmatprep.subr.bf16.mxu0 %v5065_v27  ;;  %2945 = vmatprep.subr.bf16.mxu1 %v5067_v58 }
 0x430   : > { %v1999_v4 = vpop.f32.mrf.mxu0  ;;  %v2042_v13 = vpop.f32.mrf.mxu1 }
 0x431   : > { %v2051_v12 = vadd.f32 %v1999_v4, %v5520_v51  ;;  %v2053_v52 = vadd.f32 %v2042_v13, %v5525_v10 }
 0x432   : > { %v2001_v16 = vpop.f32.mrf.mxu0  ;;  %v2044_v11 = vpop.f32.mrf.mxu1 }
 0x433   : > { %v3753_v17 = vmul.f32 -1.442695, %v2051_v12  ;;  %v2052_v54 = vadd.f32 %v2001_v16, %v5521_v36  ;;  %v2054_v6 = vadd.f32 %v2044_v11, %v5524_v57 }
 0x434   : > { %v2003_v3 = vpop.f32.mrf.mxu0  ;;  %v2046_v62 = vpop.f32.mrf.mxu1 }
 0x435   : > { %4284 = vpow2.f32 %v3753_v17  ;;  %v3755_v59 = vmul.f32 -1.442695, %v2052_v54  ;;  %v2055_v55 = vadd.f32 %v2003_v3, %v5522_v5  ;;  %v3757_v8 = vmul.f32 -1.442695, %v2054_v6 }
 0x436   : > { %v2005_v9 = vpop.f32.mrf.mxu0  ;;  %v2048_v2 = vpop.f32.mrf.mxu1  ;;  %v2057_v4 = vadd.f32 %v2046_v62, %v5527_v18 }
 0x437   : > { %4286 = vpow2.f32 %v3755_v59  ;;  %v3754_v7 = vmul.f32 -1.442695, %v2055_v55  ;;  %v2056_v1 = vadd.f32 %v2005_v9, %v5523_v15  ;;  %v2058_v45 = vadd.f32 %v2048_v2, %v5526_v60 }
 0x439   : > { %4288 = vpow2.f32 %v3754_v7  ;;  %v3756_v14 = vmul.f32 -1.442695, %v2056_v1  ;;  %v3758_v16 = vmul.f32 -1.442695, %v2058_v45 }
 0x43b   : > { %4290 = vpow2.f32 %v3756_v14 }
 0x43c   : > { %4292 = vtanh.f32 %v2053_v52 }
 0x43d   : > { %4294 = vpow2.f32 %v3757_v8 }
 0x442   : > { %v4285_v61 = vpop.eup %4284 }
 0x443   : > { %v2065_v51 = vadd.f32 1.0, %v4285_v61 }
 0x444   : > { %v4287_v12 = vpop.eup %4286 }
 0x445   : > { %4296 = vrcp.f32 %v2065_v51  ;;  %v2077_v17 = vadd.f32 1.0, %v4287_v12 }
 0x446   : > { %v4289_v36 = vpop.eup %4288  ;;  %4298 = vtanh.f32 %v2057_v4 }
 0x447   : > { %4300 = vrcp.f32 %v2077_v17  ;;  %v2066_v54 = vadd.f32 1.0, %v4289_v36 }
 0x448   : > { %v4291_v3 = vpop.eup %4290  ;;  %4302 = vpow2.f32 %v3758_v16  ;;  %v2547_v16 = vld [vmem:[#allocation5] sm:$0xff] }
 0x449   : > { %4304 = vrcp.f32 %v2066_v54  ;;  %v2078_v13 = vadd.f32 1.0, %v4291_v3  ;;  %v4293_v59 = vpop.eup %4292 }
 0x44a   : > { %v4295_v11 = vpop.eup %4294 }
 0x44b   : > { %4306 = vrcp.f32 %v2078_v13  ;;  %v2091_v15 = vadd.f32 1.0, %v4295_v11 }
 0x44d   : > { %4308 = vrcp.f32 %v2091_v15 }
 0x450   : > { %v2402_v36 = vpop.f32.mrf.mxu0  ;;  %v2475_v54 = vpop.f32.mrf.mxu1 }
 0x452   : > { %v4297_v5 = vpop.eup %4296  ;;  %v2404_v3 = vpop.f32.mrf.mxu0 }
 0x453   : > { %v4299_v55 = vpop.eup %4298  ;;  %v2099_v9 = vmul.f32 %v4297_v5, %v4293_v59  ;;  %v2477_v13 = vpop.f32.mrf.mxu1 }
 0x454   : > { %v4301_v7 = vpop.eup %4300  ;;  %v2406_v59 = vpop.f32.mrf.mxu0 }
 0x455   : > { %v4303_v1 = vpop.eup %4302  ;;  %v2097_v62 = vmul.f32 %v4301_v7, %v5050_v33  ;;  %v5209_v11 = vpop.f32.mrf.mxu1 }
 0x456   : > { %v4305_v14 = vpop.eup %4304  ;;  %v2092_v10 = vadd.f32 1.0, %v4303_v1  ;;  %v2408_v5 = vpop.f32.mrf.mxu0 }
 0x457   : > { %v2101_v57 = vadd.f32 %v2099_v9, %v2097_v62  ;;  %v2100_v6 = vmul.f32 %v4305_v14, %v4299_v55  ;;  %v2481_v55 = vpop.f32.mrf.mxu1 }
 0x458   : > { %v4307_v2 = vpop.eup %4306  ;;  %v5211_v9 = vpop.f32.mrf.mxu0 }
 0x459   : > { %4310 = vtanh.f32 %v2101_v57  ;;  %2120 = vst [vmem:[#allocation6 + $0x8] sm:$0xff] %v2101_v57  ;;  %v2098_v52 = vmul.f32 %v4307_v2, %v5053_v39  ;;  %v2546_v39 = vld [vmem:[#allocation5 + $0x8] sm:$0xff]  ;;  %v5213_v7 = vpop.f32.mrf.mxu1 }
 0x45a   : > { %4312 = vrcp.f32 %v2092_v10  ;;  %v4309_v60 = vpop.eup %4308  ;;  %v2558_v17 = vpack.c.bf16 %v2547_v16, %v2546_v39  ;;  %5528 = vst [vmem:[#allocation17_spill] sm:$0xff] %v5213_v7  ;;  %v5215_v15 = vpop.f32.mrf.mxu0  ;;  %v5545_v16 = vld [vmem:[#allocation15_spill] sm:$0xff] }
 0x45b   : > { %v2102_v8 = vadd.f32 %v2100_v6, %v2098_v52  ;;  %v5217_v1 = vpop.f32.mrf.mxu1 }
 0x45c   : > { %5529 = vst [vmem:[#allocation16_spill] sm:$0xff] %v5217_v1  ;;  %v5219_v62 = vpop.f32.mrf.mxu0 }
 0x45d   : > { %4314 = vtanh.f32 %v2102_v8  ;;  %2121 = vst [vmem:[#allocation6] sm:$0xff] %v2102_v8  ;;  %v5221_v14 = vpop.f32.mrf.mxu1 }
 0x45e   : > { %5530 = vst [vmem:[#allocation18_spill] sm:$0xff] %v5221_v14  ;;  %v5223_v57 = vpop.f32.mrf.mxu0 }
 0x45f   : > { %5531 = vst [vmem:[#allocation20_spill] sm:$0xff] %v5223_v57  ;;  %v5225_v6 = vpop.f32.mrf.mxu1 }
 0x460   : > { %5532 = vst [vmem:[#allocation22_spill] sm:$0xff] %v5225_v6  ;;  %v5227_v2 = vpop.f32.mrf.mxu0 }
 0x461   : > { %5533 = vst [vmem:[#allocation24_spill] sm:$0xff] %v5227_v2  ;;  %v5229_v10 = vpop.f32.mrf.mxu1 }
 0x462   : > { %5534 = vst [vmem:[#allocation21_spill] sm:$0xff] %v5229_v10  ;;  %v5231_v52 = vpop.f32.mrf.mxu0 }
 0x463   : > { %5535 = vst [vmem:[#allocation19_spill] sm:$0xff] %v5231_v52  ;;  %v5233_v8 = vpop.f32.mrf.mxu1 }
 0x464   : > { %5536 = vst [vmem:[#allocation25_spill] sm:$0xff] %v5233_v8 }
 0x466   : > { %v4311_v45 = vpop.eup %4310 }
 0x467   : > { %v2105_v61 = vmul.f32 %v4311_v45, %v4309_v60  ;;  %v4313_v18 = vpop.eup %4312  ;;  %v5235_v60 = vpop.f32.mrf.mxu0 }
 0x468   : > { %5537 = vst [vmem:[#allocation23_spill] sm:$0xff] %v5235_v60  ;;  %v5237_v45 = vpop.f32.mrf.mxu1 }
 0x469   : > { %2118 = vst [vmem:[#allocation4] sm:$0xff] %v2105_v61  ;;  %5538 = vst [vmem:[#allocation26_spill] sm:$0xff] %v5237_v45 }
 0x46a   : > { %v4315_v33 = vpop.eup %4314 }
 0x46b   : > { %v2106_v4 = vmul.f32 %v4315_v33, %v4313_v18  ;;  %v5241_v18 = vpop.f32.mrf.mxu1  ;;  %v2162_v33 = vld [vmem:[%s5474_s6] sm:$0xf] }
 0x46c   : > { %5540 = vst [vmem:[#allocation30_spill] sm:$0xff] %v5241_v18  ;;  %v5549_v18 = vsub.s32 1, %v5545_v16 }
 0x46d   : > { %v3894_v51 = vpack.c.bf16 %v2106_v4, %v2105_v61  ;;  %2119 = vst [vmem:[#allocation4 + $0x8] sm:$0xff] %v2106_v4  ;;  %v5239_v61 = vpop.f32.mrf.mxu0 }
 0x46e   : > { %5539 = vst [vmem:[#allocation28_spill] sm:$0xff] %v5239_v61  ;;  %v5264_v61 = vrot.slane %v2162_v33, %v5549_v18 }
 0x46f   : > { %3895 = vst [vmem:[#allocation3 + $0x18] sm:$0xff] %v3894_v51  }
 0x470   : > { %v2409_v18 = vadd.f32 %v2408_v5, %v5264_v61 }
 0x476   : > { %v4175_v12 = vld [vmem:[#allocation3 + $0x18] sm:$0xff]  }
 0x477   : > { %2431 = vmatmul.mubr.bf16.gmra.mxu0 %v4175_v12  ;;  %2504 = vmatmul.mubr.bf16.gmra.mxu1 %v4175_v12 }
 0x478   : > { %2783 = vmatprep.mubr.bf16.mxu0 %v5509_v53  ;;  %2826 = vmatprep.mubr.bf16.mxu1 %v5509_v53 }
 0x47f   : > { %2784 = vmatmul.mubr.bf16.vlgmr.msra.gmra.mxu0 %v2558_v17  ;;  %2827 = vmatmul.mubr.bf16.vlgmr.msra.gmra.mxu1 %v2558_v17  ;;  %v5546_v17 = vsub.s32 0, %v5545_v16 }
 0x480   : > { %2903 = vmatpush1.bf16.msra.mxu0 %v5069_v0  ;;  %2946 = vmatpush1.bf16.msra.mxu1 %v5071_v56 }
 0x481   : > { %2904 = vmatprep.subr.bf16.mxu0 %v5077_v19  ;;  %2947 = vmatprep.subr.bf16.mxu1 %v5079_v20  ;;  %v5256_v10 = vrot.slane %v2162_v33, %v5546_v17 }
 0x482   : > { %2934 = vmatprep.mubr.bf16.mxu0 %v5509_v53  ;;  %2977 = vmatprep.mubr.bf16.mxu1 %v5509_v53 }
 0x484   : > { %2905 = vmatpush1.bf16.msra.mxu0 %v5081_v21  ;;  %2948 = vmatpush1.bf16.msra.mxu1 %v5083_v22 }
 0x485   : > { %2906 = vmatprep.subr.bf16.mxu0 %v5089_v23  ;;  %2949 = vmatprep.subr.bf16.mxu1 %v5091_v24 }
 0x488   : > { %2907 = vmatpush1.bf16.msra.mxu0 %v5093_v25  ;;  %2950 = vmatpush1.bf16.msra.mxu1 %v5095_v26 }
 0x489   : > { %2908 = vmatprep.subr.bf16.mxu0 %v5101_v28  ;;  %2951 = vmatprep.subr.bf16.mxu1 %v5103_v29 }
 0x48c   : > { %2909 = vmatpush1.bf16.msra.mxu0 %v5105_v30  ;;  %2952 = vmatpush1.bf16.msra.mxu1 %v5107_v31 }
 0x48d   : > { %2910 = vmatprep.subr.bf16.mxu0 %v5111_v32  ;;  %2953 = vmatprep.subr.bf16.mxu1 %v5113_v34 }
 0x490   : > { %2911 = vmatpush1.bf16.msra.mxu0 %v5117_v35  ;;  %2954 = vmatpush1.bf16.msra.mxu1 %v5119_v37 }
 0x491   : > { %2912 = vmatprep.subr.bf16.mxu0 %v5123_v38  ;;  %2955 = vmatprep.subr.bf16.mxu1 %v5125_v40 }
 0x494   : > { %2913 = vmatpush1.bf16.msra.mxu0 %v5129_v41  ;;  %2956 = vmatpush1.bf16.msra.mxu1 %v5131_v63 }
 0x495   : > { %2914 = vmatprep.subr.bf16.mxu0 %v5137_v42  ;;  %2957 = vmatprep.subr.bf16.mxu1 %v5139_v43 }
 0x498   : > { %2915 = vmatpush1.bf16.msra.mxu0 %v5141_v44  ;;  %2958 = vmatpush1.bf16.msra.mxu1 %v5143_v46 }
 0x499   : > { %2916 = vmatprep.subr.bf16.mxu0 %v5145_v47  ;;  %2959 = vmatprep.subr.bf16.mxu1 %v5147_v48 }
 0x49c   : > { %2917 = vmatpush1.bf16.msra.mxu0 %v5153_v49  ;;  %2960 = vmatpush1.bf16.msra.mxu1 %v5155_v50 }
 0x49d   : > { %3053 = vmatprep.subr.bf16.mxu0 %v5065_v27  ;;  %3096 = vmatprep.subr.bf16.mxu1 %v5067_v58 }
 0x537   : > { %v5246_v4 = vpop.f32.mrf.mxu0  ;;  %v5248_v51 = vpop.f32.mrf.mxu1 }
 0x538   : > { %5541 = vst [vmem:[#allocation32_spill] sm:$0xff] %v5246_v4  ;;  %5542 = vst [vmem:[#allocation29_spill] sm:$0xff] %v5248_v51  ;;  %v2403_v51 = vadd.f32 %v2402_v36, %v5256_v10 }
 0x539   : > { %v5250_v12 = vpop.f32.mrf.mxu0  ;;  %v5252_v39 = vpop.f32.mrf.mxu1 }
 0x53a   : > { %5543 = vst [vmem:[#allocation27_spill] sm:$0xff] %v5250_v12  ;;  %5544 = vst [vmem:[#allocation33_spill] sm:$0xff] %v5252_v39  ;;  %v2405_v39 = vadd.f32 %v2404_v3, %v5264_v61  ;;  %v5552_v3 = vsub.s32 3, %v5545_v16 }
 0x53b   : > { %v5258_v45 = vpop.f32.mrf.mxu0  ;;  %v5260_v8 = vpop.f32.mrf.mxu1 }
 0x53c   : > { %5547 = vst [vmem:[#allocation31_spill] sm:$0xff] %v5258_v45  ;;  %5548 = vst [vmem:[#allocation15_spill] sm:$0xff] %v5260_v8  ;;  %v2407_v45 = vadd.f32 %v2406_v59, %v5256_v10 }
 0x53d   : > { %v5266_v60 = vpop.f32.mrf.mxu0  ;;  %v5268_v4 = vpop.f32.mrf.mxu1 }
 0x53e   : > { %5550 = vst [vmem:[#allocation34_spill] sm:$0xff] %v5266_v60  ;;  %5551 = vst [vmem:[#allocation35_spill] sm:$0xff] %v5268_v4 }
 0x53f   : > { %v2785_v12 = vpop.f32.mrf.mxu0  ;;  %v2828_v17 = vpop.f32.mrf.mxu1 }
 0x540   : > { %v2837_v52 = vadd.f32 %v2785_v12, %v2403_v51  ;;  %v5276_v51 = vrot.slane %v2162_v33, %v5552_v3 }
 0x541   : > { %v2787_v2 = vpop.f32.mrf.mxu0  ;;  %v2830_v60 = vpop.f32.mrf.mxu1 }
 0x542   : > { %v3829_v14 = vmul.f32 -1.442695, %v2837_v52  ;;  %v2838_v8 = vadd.f32 %v2787_v2, %v2405_v39  ;;  %v5553_v2 = vsub.s32 2, %v5545_v16  ;;  %v2478_v5 = vadd.f32 %v2477_v13, %v5276_v51 }
 0x543   : > { %v2789_v6 = vpop.f32.mrf.mxu0  ;;  %v2832_v12 = vpop.f32.mrf.mxu1 }
 0x544   : > { %4316 = vpow2.f32 %v3829_v14  ;;  %v3831_v7 = vmul.f32 -1.442695, %v2838_v8  ;;  %v2841_v1 = vadd.f32 %v2789_v6, %v2407_v45  ;;  %v5280_v52 = vrot.slane %v2162_v33, %v5553_v2  ;;  %v2548_v2 = vld [vmem:[#allocation7] sm:$0xff] }
 0x545   : > { %v2791_v4 = vpop.f32.mrf.mxu0  ;;  %v2834_v14 = vpop.f32.mrf.mxu1 }
 0x546   : > { %4318 = vpow2.f32 %v3831_v7  ;;  %v3830_v36 = vmul.f32 -1.442695, %v2841_v1  ;;  %v2842_v57 = vadd.f32 %v2791_v4, %v2409_v18  ;;  %v2476_v6 = vadd.f32 %v2475_v54, %v5280_v52 }
 0x547   : > { %v2482_v7 = vadd.f32 %v2481_v55, %v5276_v51  ;;  %v2840_v1 = vadd.f32 %v2830_v60, %v2478_v5 }
 0x548   : > { %4320 = vpow2.f32 %v3830_v36  ;;  %v3832_v59 = vmul.f32 -1.442695, %v2842_v57  ;;  %v2839_v8 = vadd.f32 %v2828_v17, %v2476_v6  ;;  %v2480_v57 = vadd.f32 %v5209_v11, %v5280_v52 }
 0x549   : > { %v2844_v45 = vadd.f32 %v2834_v14, %v2482_v7  ;;  %v3833_v39 = vmul.f32 -1.442695, %v2840_v1 }
 0x54a   : > { %4322 = vpow2.f32 %v3832_v59  ;;  %v2843_v3 = vadd.f32 %v2832_v12, %v2480_v57 }
 0x54b   : > { %4324 = vtanh.f32 %v2839_v8  ;;  %v3834_v33 = vmul.f32 -1.442695, %v2844_v45  ;;  %v2549_v45 = vld [vmem:[#allocation7 + $0x8] sm:$0xff] }
 0x551   : > { %v4317_v4 = vpop.eup %4316 }
 0x552   : > { %v2851_v18 = vadd.f32 1.0, %v4317_v4 }
 0x553   : > { %v4319_v36 = vpop.eup %4318 }
 0x554   : > { %4326 = vrcp.f32 %v2851_v18  ;;  %v2863_v16 = vadd.f32 1.0, %v4319_v36 }
 0x555   : > { %v4321_v13 = vpop.eup %4320  ;;  %4328 = vpow2.f32 %v3833_v39 }
 0x556   : > { %4330 = vrcp.f32 %v2863_v16  ;;  %v2852_v54 = vadd.f32 1.0, %v4321_v13 }
 0x557   : > { %v4323_v55 = vpop.eup %4322  ;;  %4332 = vpow2.f32 %v3834_v33 }
 0x558   : > { %4334 = vrcp.f32 %v2852_v54  ;;  %v2864_v60 = vadd.f32 1.0, %v4323_v55  ;;  %v4325_v17 = vpop.eup %4324 }
 0x559   : > { %4336 = vtanh.f32 %v2843_v3 }
 0x55a   : > { %4338 = vrcp.f32 %v2864_v60 }
 0x561   : > { %v4327_v59 = vpop.eup %4326 }
 0x562   : > { %v4329_v5 = vpop.eup %4328  ;;  %v2885_v6 = vmul.f32 %v4327_v59, %v4325_v17  ;;  %v2413_v59 = vadd.f32 %v5211_v9, %v5256_v10 }
 0x563   : > { %v4331_v11 = vpop.eup %4330  ;;  %v2877_v8 = vadd.f32 1.0, %v4329_v5  ;;  %v2415_v5 = vadd.f32 %v5215_v15, %v5264_v61 }
 0x564   : > { %v4333_v14 = vpop.eup %4332  ;;  %v2883_v7 = vmul.f32 %v4331_v11, %v2548_v2 }
 0x565   : > { %v4335_v1 = vpop.eup %4334  ;;  %v2878_v18 = vadd.f32 1.0, %v4333_v14  ;;  %4340 = vrcp.f32 %v2877_v8 }
 0x566   : > { %v4337_v12 = vpop.eup %4336  ;;  %v5287_v4 = vadd.f32 %v2885_v6, %v2883_v7  ;;  %v2417_v7 = vadd.f32 %v5219_v62, %v5256_v10 }
 0x567   : > { %v4339_v39 = vpop.eup %4338  ;;  %v2886_v36 = vmul.f32 %v4337_v12, %v4335_v1 }
 0x568   : > { %v2884_v57 = vmul.f32 %v4339_v39, %v2549_v45  ;;  %4342 = vtanh.f32 %v5287_v4 }
 0x569   : > { %4344 = vrcp.f32 %v2878_v18 }
 0x56a   : > { %v5289_v33 = vadd.f32 %v2886_v36, %v2884_v57 }
 0x56c   : > { %4346 = vtanh.f32 %v5289_v33 }
 0x572   : > { %v4341_v16 = vpop.eup %4340 }
 0x575   : > { %v4343_v13 = vpop.eup %4342 }
 0x576   : > { %v4345_v3 = vpop.eup %4344  ;;  %v2891_v55 = vmul.f32 %v4343_v13, %v4341_v16  ;;  %v5555_v13 = vld [vmem:[#allocation16_spill] sm:$0xff] }
 0x577   : > { %v2488_v62 = vadd.f32 %v5555_v13, %v5276_v51 }
 0x579   : > { %v4347_v54 = vpop.eup %4346 }
 0x57a   : > { %v2892_v60 = vmul.f32 %v4347_v54, %v4345_v3  ;;  %v5556_v54 = vld [vmem:[#allocation17_spill] sm:$0xff] }
 0x57c   : > { %v2901_v17 = vpack.c.bf16 %v2892_v60, %v2891_v55  ;;  %v2486_v55 = vadd.f32 %v5556_v54, %v5280_v52 }
 0x57e   : > { %2935 = vmatmul.mubr.bf16.vlgmr.msra.gmra.mxu0 %v2901_v17  ;;  %2978 = vmatmul.mubr.bf16.vlgmr.msra.gmra.mxu1 %v2901_v17  ;;  %v5557_v17 = vld [vmem:[#allocation22_spill] sm:$0xff] }
 0x57f   : > { %3054 = vmatpush1.bf16.msra.mxu0 %v5069_v0  ;;  %3097 = vmatpush1.bf16.msra.mxu1 %v5071_v56 }
 0x580   : > { %3055 = vmatprep.subr.bf16.mxu0 %v5077_v19  ;;  %3098 = vmatprep.subr.bf16.mxu1 %v5079_v20 }
 0x581   : > { %3085 = vmatprep.mubr.bf16.mxu0 %v5509_v53  ;;  %3128 = vmatprep.mubr.bf16.mxu1 %v5509_v53 }
 0x583   : > { %3056 = vmatpush1.bf16.msra.mxu0 %v5081_v21  ;;  %3099 = vmatpush1.bf16.msra.mxu1 %v5083_v22 }
 0x584   : > { %3057 = vmatprep.subr.bf16.mxu0 %v5089_v23  ;;  %3100 = vmatprep.subr.bf16.mxu1 %v5091_v24 }
 0x587   : > { %3058 = vmatpush1.bf16.msra.mxu0 %v5093_v25  ;;  %3101 = vmatpush1.bf16.msra.mxu1 %v5095_v26 }
 0x588   : > { %3059 = vmatprep.subr.bf16.mxu0 %v5101_v28  ;;  %3102 = vmatprep.subr.bf16.mxu1 %v5103_v29 }
 0x58b   : > { %3060 = vmatpush1.bf16.msra.mxu0 %v5105_v30  ;;  %3103 = vmatpush1.bf16.msra.mxu1 %v5107_v31 }
 0x58c   : > { %3061 = vmatprep.subr.bf16.mxu0 %v5111_v32  ;;  %3104 = vmatprep.subr.bf16.mxu1 %v5113_v34 }
 0x58f   : > { %3062 = vmatpush1.bf16.msra.mxu0 %v5117_v35  ;;  %3105 = vmatpush1.bf16.msra.mxu1 %v5119_v37 }
 0x590   : > { %3063 = vmatprep.subr.bf16.mxu0 %v5123_v38  ;;  %3106 = vmatprep.subr.bf16.mxu1 %v5125_v40 }
 0x593   : > { %3064 = vmatpush1.bf16.msra.mxu0 %v5129_v41  ;;  %3107 = vmatpush1.bf16.msra.mxu1 %v5131_v63 }
 0x594   : > { %3065 = vmatprep.subr.bf16.mxu0 %v5137_v42  ;;  %3108 = vmatprep.subr.bf16.mxu1 %v5139_v43 }
 0x597   : > { %3066 = vmatpush1.bf16.msra.mxu0 %v5141_v44  ;;  %3109 = vmatpush1.bf16.msra.mxu1 %v5143_v46 }
 0x598   : > { %3067 = vmatprep.subr.bf16.mxu0 %v5145_v47  ;;  %3110 = vmatprep.subr.bf16.mxu1 %v5147_v48 }
 0x59b   : > { %3068 = vmatpush1.bf16.msra.mxu0 %v5153_v49  ;;  %3111 = vmatpush1.bf16.msra.mxu1 %v5155_v50 }
 0x59c   : > { %3204 = vmatprep.subr.bf16.mxu0 %v5065_v27  ;;  %3247 = vmatprep.subr.bf16.mxu1 %v5067_v58  ;;  %v5554_v27 = vld [vmem:[#allocation20_spill] sm:$0xff] }
 0x59d   : > { %v2419_v12 = vadd.f32 %v5554_v27, %v5264_v61 }
 0x63e   : > { %v2936_v2 = vpop.f32.mrf.mxu0  ;;  %v2979_v14 = vpop.f32.mrf.mxu1 }
 0x63f   : > { %v2988_v11 = vadd.f32 %v2936_v2, %v2413_v59  ;;  %v2492_v59 = vadd.f32 %v5557_v17, %v5276_v51  ;;  %v2990_v2 = vadd.f32 %v2979_v14, %v2486_v55 }
 0x640   : > { %v2938_v6 = vpop.f32.mrf.mxu0  ;;  %v2981_v39 = vpop.f32.mrf.mxu1 }
 0x641   : > { %v3835_v1 = vmul.f32 -1.442695, %v2988_v11  ;;  %v2989_v8 = vadd.f32 %v2938_v6, %v2415_v5  ;;  %v2991_v3 = vadd.f32 %v2981_v39, %v2488_v62  ;;  %v5558_v5 = vld [vmem:[#allocation18_spill] sm:$0xff] }
 0x642   : > { %v2940_v45 = vpop.f32.mrf.mxu0  ;;  %v2983_v57 = vpop.f32.mrf.mxu1  ;;  %v2490_v11 = vadd.f32 %v5558_v5, %v5280_v52 }
 0x643   : > { %4348 = vpow2.f32 %v3835_v1  ;;  %v3837_v58 = vmul.f32 -1.442695, %v2989_v8  ;;  %v2992_v9 = vadd.f32 %v2940_v45, %v2417_v7  ;;  %v3839_v6 = vmul.f32 -1.442695, %v2991_v3 }
 0x644   : > { %v2942_v18 = vpop.f32.mrf.mxu0  ;;  %v2985_v60 = vpop.f32.mrf.mxu1  ;;  %v2994_v8 = vadd.f32 %v2983_v57, %v2490_v11 }
 0x645   : > { %4350 = vpow2.f32 %v3837_v58  ;;  %v3836_v36 = vmul.f32 -1.442695, %v2992_v9  ;;  %v2993_v15 = vadd.f32 %v2942_v18, %v2419_v12  ;;  %v2995_v7 = vadd.f32 %v2985_v60, %v2492_v59 }
 0x647   : > { %4352 = vpow2.f32 %v3836_v36  ;;  %v3838_v16 = vmul.f32 -1.442695, %v2993_v15  ;;  %v3840_v12 = vmul.f32 -1.442695, %v2995_v7 }
 0x649   : > { %4354 = vpow2.f32 %v3838_v16 }
 0x64a   : > { %4356 = vtanh.f32 %v2990_v2 }
 0x64b   : > { %4358 = vpow2.f32 %v3839_v6 }
 0x650   : > { %v4349_v1 = vpop.eup %4348 }
 0x651   : > { %v3002_v45 = vadd.f32 1.0, %v4349_v1 }
 0x652   : > { %v4351_v27 = vpop.eup %4350 }
 0x653   : > { %4360 = vrcp.f32 %v3002_v45  ;;  %v3014_v58 = vadd.f32 1.0, %v4351_v27 }
 0x654   : > { %v4353_v39 = vpop.eup %4352  ;;  %4362 = vtanh.f32 %v2994_v8 }
 0x655   : > { %4364 = vrcp.f32 %v3014_v58  ;;  %v3003_v9 = vadd.f32 1.0, %v4353_v39  ;;  %v5566_v58 = vld [vmem:[#allocation26_spill] sm:$0xff] }
 0x656   : > { %v4355_v18 = vpop.eup %4354  ;;  %4366 = vpow2.f32 %v3840_v12  ;;  %v2500_v39 = vadd.f32 %v5566_v58, %v5280_v52  ;;  %v5571_v58 = vld [vmem:[#allocation33_spill] sm:$0xff] }
 0x657   : > { %4368 = vrcp.f32 %v3003_v9  ;;  %v3015_v14 = vadd.f32 1.0, %v4355_v18  ;;  %v4357_v36 = vpop.eup %4356 }
 0x658   : > { %v4359_v15 = vpop.eup %4358 }
 0x659   : > { %4370 = vrcp.f32 %v3015_v14  ;;  %v3028_v60 = vadd.f32 1.0, %v4359_v15 }
 0x65b   : > { %4372 = vrcp.f32 %v3028_v60 }
 0x660   : > { %v4361_v16 = vpop.eup %4360 }
 0x661   : > { %v4363_v57 = vpop.eup %4362  ;;  %v3036_v13 = vmul.f32 %v4361_v16, %v4357_v36 }
 0x662   : > { %v4365_v62 = vpop.eup %4364 }
 0x663   : > { %v4367_v3 = vpop.eup %4366  ;;  %v3034_v54 = vmul.f32 %v4365_v62, %v5287_v4 }
 0x664   : > { %v4369_v55 = vpop.eup %4368  ;;  %v3029_v5 = vadd.f32 1.0, %v4367_v3 }
 0x665   : > { %v5344_v17 = vadd.f32 %v3036_v13, %v3034_v54  ;;  %v3037_v59 = vmul.f32 %v4369_v55, %v4363_v57 }
 0x666   : > { %v4371_v2 = vpop.eup %4370 }
 0x667   : > { %v3035_v11 = vmul.f32 %v4371_v2, %v5289_v33  ;;  %4374 = vtanh.f32 %v5344_v17 }
 0x668   : > { %4376 = vrcp.f32 %v3029_v5  ;;  %v4373_v7 = vpop.eup %4372 }
 0x669   : > { %v5347_v6 = vadd.f32 %v3037_v59, %v3035_v11 }
 0x66b   : > { %4378 = vtanh.f32 %v5347_v6 }
 0x674   : > { %v4375_v1 = vpop.eup %4374 }
 0x675   : > { %v4377_v4 = vpop.eup %4376  ;;  %v3042_v45 = vmul.f32 %v4375_v1, %v4373_v7 }
 0x678   : > { %v4379_v8 = vpop.eup %4378 }
 0x679   : > { %v3043_v27 = vmul.f32 %v4379_v8, %v4377_v4 }
 0x67b   : > { %v3052_v12 = vpack.c.bf16 %v3043_v27, %v3042_v45 }
 0x67d   : > { %3086 = vmatmul.mubr.bf16.vlgmr.msra.gmra.mxu0 %v3052_v12  ;;  %3129 = vmatmul.mubr.bf16.vlgmr.msra.gmra.mxu1 %v3052_v12 }
 0x67e   : > { %3205 = vmatpush1.bf16.msra.mxu0 %v5069_v0  ;;  %3248 = vmatpush1.bf16.msra.mxu1 %v5071_v56 }
 0x67f   : > { %3206 = vmatprep.subr.bf16.mxu0 %v5077_v19  ;;  %3249 = vmatprep.subr.bf16.mxu1 %v5079_v20  ;;  %v5560_v19 = vld [vmem:[#allocation19_spill] sm:$0xff] }
 0x680   : > { %3236 = vmatprep.mubr.bf16.mxu0 %v5509_v53  ;;  %3279 = vmatprep.mubr.bf16.mxu1 %v5509_v53  ;;  %v5559_v53 = vld [vmem:[#allocation24_spill] sm:$0xff]  ;;  %v2425_v20 = vadd.f32 %v5560_v19, %v5264_v61 }
 0x681   : > { %v2423_v0 = vadd.f32 %v5559_v53, %v5256_v10 }
 0x682   : > { %3207 = vmatpush1.bf16.msra.mxu0 %v5081_v21  ;;  %3250 = vmatpush1.bf16.msra.mxu1 %v5083_v22 }
 0x683   : > { %3208 = vmatprep.subr.bf16.mxu0 %v5089_v23  ;;  %3251 = vmatprep.subr.bf16.mxu1 %v5091_v24  ;;  %v5561_v24 = vld [vmem:[#allocation23_spill] sm:$0xff] }
 0x686   : > { %3209 = vmatpush1.bf16.msra.mxu0 %v5093_v25  ;;  %3252 = vmatpush1.bf16.msra.mxu1 %v5095_v26  ;;  %v2427_v25 = vadd.f32 %v5561_v24, %v5256_v10 }
 0x687   : > { %3210 = vmatprep.subr.bf16.mxu0 %v5101_v28  ;;  %3253 = vmatprep.subr.bf16.mxu1 %v5103_v29 }
 0x68a   : > { %3211 = vmatpush1.bf16.msra.mxu0 %v5105_v30  ;;  %3254 = vmatpush1.bf16.msra.mxu1 %v5107_v31  ;;  %v5562_v30 = vld [vmem:[#allocation28_spill] sm:$0xff] }
 0x68b   : > { %3212 = vmatprep.subr.bf16.mxu0 %v5111_v32  ;;  %3255 = vmatprep.subr.bf16.mxu1 %v5113_v34  ;;  %v2429_v31 = vadd.f32 %v5562_v30, %v5264_v61 }
 0x68e   : > { %3213 = vmatpush1.bf16.msra.mxu0 %v5117_v35  ;;  %3256 = vmatpush1.bf16.msra.mxu1 %v5119_v37 }
 0x68f   : > { %3214 = vmatprep.subr.bf16.mxu0 %v5123_v38  ;;  %3257 = vmatprep.subr.bf16.mxu1 %v5125_v40 }
 0x692   : > { %3215 = vmatpush1.bf16.msra.mxu0 %v5129_v41  ;;  %3258 = vmatpush1.bf16.msra.mxu1 %v5131_v63 }
 0x693   : > { %3216 = vmatprep.subr.bf16.mxu0 %v5137_v42  ;;  %3259 = vmatprep.subr.bf16.mxu1 %v5139_v43  ;;  %v5563_v42 = vld [vmem:[#allocation25_spill] sm:$0xff] }
 0x694   : > { %v2498_v43 = vadd.f32 %v5563_v42, %v5276_v51 }
 0x696   : > { %3217 = vmatpush1.bf16.msra.mxu0 %v5141_v44  ;;  %3260 = vmatpush1.bf16.msra.mxu1 %v5143_v46  ;;  %v5564_v46 = vld [vmem:[#allocation21_spill] sm:$0xff] }
 0x697   : > { %3218 = vmatprep.subr.bf16.mxu0 %v5145_v47  ;;  %3261 = vmatprep.subr.bf16.mxu1 %v5147_v48  ;;  %v2496_v47 = vadd.f32 %v5564_v46, %v5280_v52 }
 0x69a   : > { %3219 = vmatpush1.bf16.msra.mxu0 %v5153_v49  ;;  %3262 = vmatpush1.bf16.msra.mxu1 %v5155_v50  ;;  %v5565_v49 = vld [vmem:[#allocation30_spill] sm:$0xff] }
 0x69b   : > { %v2502_v50 = vadd.f32 %v5565_v49, %v5276_v51 }
 0x73d   : > { %v3087_v56 = vpop.f32.mrf.mxu0  ;;  %v3130_v22 = vpop.f32.mrf.mxu1 }
 0x73e   : > { %v3139_v21 = vadd.f32 %v3087_v56, %v2423_v0  ;;  %v3141_v33 = vadd.f32 %v3130_v22, %v2496_v47 }
 0x73f   : > { %v3089_v23 = vpop.f32.mrf.mxu0  ;;  %v3132_v34 = vpop.f32.mrf.mxu1 }
 0x740   : > { %v3841_v26 = vmul.f32 -1.442695, %v3139_v21  ;;  %v3140_v28 = vadd.f32 %v3089_v23, %v2425_v20  ;;  %v3142_v44 = vadd.f32 %v3132_v34, %v2498_v43 }
 0x741   : > { %v3091_v29 = vpop.f32.mrf.mxu0  ;;  %v3134_v41 = vpop.f32.mrf.mxu1 }
 0x742   : > { %4380 = vpow2.f32 %v3841_v26  ;;  %v3843_v32 = vmul.f32 -1.442695, %v3140_v28  ;;  %v3143_v35 = vadd.f32 %v3091_v29, %v2427_v25  ;;  %v3845_v9 = vmul.f32 -1.442695, %v3142_v44  ;;  %v5567_v26 = vld [vmem:[#allocation32_spill] sm:$0xff]  ;;  %v5568_v29 = vld [vmem:[#allocation27_spill] sm:$0xff] }
 0x743   : > { %v3093_v37 = vpop.f32.mrf.mxu0  ;;  %v3136_v48 = vpop.f32.mrf.mxu1  ;;  %v3145_v36 = vadd.f32 %v3134_v41, %v2500_v39  ;;  %v2435_v30 = vadd.f32 %v5568_v29, %v5264_v61 }
 0x744   : > { %4382 = vpow2.f32 %v3843_v32  ;;  %v3842_v38 = vmul.f32 -1.442695, %v3143_v35  ;;  %v3144_v40 = vadd.f32 %v3093_v37, %v2429_v31  ;;  %v3146_v18 = vadd.f32 %v3136_v48, %v2502_v50  ;;  %v5569_v35 = vld [vmem:[#allocation31_spill] sm:$0xff] }
 0x745   : > { %v2437_v37 = vadd.f32 %v5569_v35, %v5256_v10 }
 0x746   : > { %4384 = vpow2.f32 %v3842_v38  ;;  %v3844_v63 = vmul.f32 -1.442695, %v3144_v40  ;;  %v3846_v57 = vmul.f32 -1.442695, %v3146_v18 }
 0x748   : > { %4386 = vpow2.f32 %v3844_v63  ;;  %v5570_v63 = vld [vmem:[#allocation34_spill] sm:$0xff] }
 0x749   : > { %4388 = vtanh.f32 %v3141_v33  ;;  %v2439_v42 = vadd.f32 %v5570_v63, %v5264_v61 }
 0x74a   : > { %4390 = vpow2.f32 %v3845_v9  ;;  %v5572_v9 = vld [vmem:[#allocation29_spill] sm:$0xff] }
 0x74b   : > { %v2506_v18 = vadd.f32 %v5572_v9, %v5280_v52 }
 0x74f   : > { %v4381_v14 = vpop.eup %4380 }
 0x750   : > { %v3153_v15 = vadd.f32 1.0, %v4381_v14  ;;  %v5573_v14 = vld [vmem:[#allocation35_spill] sm:$0xff] }
 0x751   : > { %v4383_v16 = vpop.eup %4382 }
 0x752   : > { %4392 = vrcp.f32 %v3153_v15  ;;  %v3165_v13 = vadd.f32 1.0, %v4383_v16  ;;  %v5574_v16 = vld [vmem:[#allocation15_spill] sm:$0xff] }
 0x753   : > { %v4385_v62 = vpop.eup %4384  ;;  %4394 = vtanh.f32 %v3145_v36  ;;  %v2512_v36 = vadd.f32 %v5573_v14, %v5276_v51 }
 0x754   : > { %4396 = vrcp.f32 %v3165_v13  ;;  %v3154_v3 = vadd.f32 1.0, %v4385_v62 }
 0x755   : > { %v4387_v54 = vpop.eup %4386  ;;  %4398 = vpow2.f32 %v3846_v57  ;;  %v2510_v57 = vadd.f32 %v5574_v16, %v5280_v52 }
 0x756   : > { %4400 = vrcp.f32 %v3154_v3  ;;  %v3166_v55 = vadd.f32 1.0, %v4387_v54  ;;  %v4389_v60 = vpop.eup %4388 }
 0x757   : > { %v4391_v59 = vpop.eup %4390 }
 0x758   : > { %4402 = vrcp.f32 %v3166_v55  ;;  %v3179_v45 = vadd.f32 1.0, %v4391_v59 }
 0x75a   : > { %4404 = vrcp.f32 %v3179_v45 }
 0x75f   : > { %v4393_v2 = vpop.eup %4392 }
 0x760   : > { %v4395_v5 = vpop.eup %4394  ;;  %v3187_v11 = vmul.f32 %v4393_v2, %v4389_v60 }
 0x761   : > { %v4397_v7 = vpop.eup %4396 }
 0x762   : > { %v4399_v1 = vpop.eup %4398  ;;  %v3185_v4 = vmul.f32 %v4397_v7, %v5344_v17 }
 0x763   : > { %v4401_v8 = vpop.eup %4400  ;;  %v3180_v0 = vadd.f32 1.0, %v4399_v1 }
 0x764   : > { %v5400_v27 = vadd.f32 %v3187_v11, %v3185_v4  ;;  %v3188_v12 = vmul.f32 %v4401_v8, %v4395_v5 }
 0x765   : > { %v4403_v53 = vpop.eup %4402 }
 0x766   : > { %v3186_v56 = vmul.f32 %v4403_v53, %v5347_v6  ;;  %4406 = vtanh.f32 %v5400_v27  ;;  %v2433_v6 = vadd.f32 %v5567_v26, %v5256_v10  ;;  %v2508_v10 = vadd.f32 %v5571_v58, %v5276_v51 }
 0x767   : > { %4408 = vrcp.f32 %v3180_v0  ;;  %v4405_v20 = vpop.eup %4404 }
 0x768   : > { %v5403_v19 = vadd.f32 %v3188_v12, %v3186_v56 }
 0x76a   : > { %4410 = vtanh.f32 %v5403_v19 }
 0x773   : > { %v4407_v21 = vpop.eup %4406 }
 0x774   : > { %v4409_v17 = vpop.eup %4408  ;;  %v3193_v23 = vmul.f32 %v4407_v21, %v4405_v20 }
 0x777   : > { %v4411_v22 = vpop.eup %4410 }
 0x778   : > { %v3194_v24 = vmul.f32 %v4411_v22, %v4409_v17 }
 0x77a   : > { %v3203_v25 = vpack.c.bf16 %v3194_v24, %v3193_v23 }
 0x77c   : > { %3237 = vmatmul.mubr.bf16.vlgmr.msra.gmra.mxu0 %v3203_v25  ;;  %3280 = vmatmul.mubr.bf16.vlgmr.msra.gmra.mxu1 %v3203_v25 }
 0x83c   : > { %v3238_v28 = vpop.f32.mrf.mxu0  ;;  %v3281_v32 = vpop.f32.mrf.mxu1 }
 0x83d   : > { %v3290_v31 = vadd.f32 %v3238_v28, %v2433_v6  ;;  %v3292_v15 = vadd.f32 %v3281_v32, %v2506_v18 }
 0x83e   : > { %v3240_v34 = vpop.f32.mrf.mxu0  ;;  %v3283_v44 = vpop.f32.mrf.mxu1 }
 0x83f   : > { %v3847_v38 = vmul.f32 -1.442695, %v3290_v31  ;;  %v3291_v40 = vadd.f32 %v3240_v34, %v2435_v30  ;;  %v3293_v39 = vadd.f32 %v3283_v44, %v2508_v10 }
 0x840   : > { %v3242_v41 = vpop.f32.mrf.mxu0  ;;  %v3285_v50 = vpop.f32.mrf.mxu1 }
 0x841   : > { %4412 = vpow2.f32 %v3847_v38  ;;  %v3849_v43 = vmul.f32 -1.442695, %v3291_v40  ;;  %v3294_v46 = vadd.f32 %v3242_v41, %v2437_v37  ;;  %v3851_v13 = vmul.f32 -1.442695, %v3293_v39 }
 0x842   : > { %v3244_v47 = vpop.f32.mrf.mxu0  ;;  %v3287_v61 = vpop.f32.mrf.mxu1  ;;  %v3296_v54 = vadd.f32 %v3285_v50, %v2510_v57 }
 0x843   : > { %4414 = vpow2.f32 %v3849_v43  ;;  %v3848_v48 = vmul.f32 -1.442695, %v3294_v46  ;;  %v3295_v49 = vadd.f32 %v3244_v47, %v2439_v42  ;;  %v3297_v62 = vadd.f32 %v3287_v61, %v2512_v36 }
 0x845   : > { %4416 = vpow2.f32 %v3848_v48  ;;  %v3850_v33 = vmul.f32 -1.442695, %v3295_v49  ;;  %v3852_v59 = vmul.f32 -1.442695, %v3297_v62 }
 0x847   : > { %4418 = vpow2.f32 %v3850_v33 }
 0x848   : > { %4420 = vtanh.f32 %v3292_v15 }
 0x849   : > { %4422 = vpow2.f32 %v3851_v13 }
 0x84e   : > { %v4413_v3 = vpop.eup %4412 }
 0x84f   : > { %v3304_v55 = vadd.f32 1.0, %v4413_v3 }
 0x850   : > { %v4415_v60 = vpop.eup %4414 }
 0x851   : > { %4424 = vrcp.f32 %v3304_v55  ;;  %v3316_v2 = vadd.f32 1.0, %v4415_v60 }
 0x852   : > { %v4417_v5 = vpop.eup %4416  ;;  %4426 = vtanh.f32 %v3296_v54 }
 0x853   : > { %4428 = vrcp.f32 %v3316_v2  ;;  %v3305_v11 = vadd.f32 1.0, %v4417_v5 }
 0x854   : > { %v4419_v51 = vpop.eup %4418  ;;  %4430 = vpow2.f32 %v3852_v59 }
 0x855   : > { %4432 = vrcp.f32 %v3305_v11  ;;  %v3317_v7 = vadd.f32 1.0, %v4419_v51  ;;  %v4421_v52 = vpop.eup %4420 }
 0x856   : > { %v4423_v1 = vpop.eup %4422 }
 0x857   : > { %4434 = vrcp.f32 %v3317_v7  ;;  %v3330_v53 = vadd.f32 1.0, %v4423_v1 }
 0x859   : > { %4436 = vrcp.f32 %v3330_v53 }
 0x85e   : > { %v4425_v4 = vpop.eup %4424 }
 0x85f   : > { %v4427_v8 = vpop.eup %4426  ;;  %v3338_v45 = vmul.f32 %v4425_v4, %v4421_v52 }
 0x860   : > { %v4429_v12 = vpop.eup %4428 }
 0x861   : > { %v4431_v0 = vpop.eup %4430  ;;  %v3336_v56 = vmul.f32 %v4429_v12, %v5400_v27 }
 0x862   : > { %v4433_v20 = vpop.eup %4432  ;;  %v3331_v23 = vadd.f32 1.0, %v4431_v0 }
 0x863   : > { %v3340_v21 = vadd.f32 %v3338_v45, %v3336_v56  ;;  %v3339_v17 = vmul.f32 %v4433_v20, %v4427_v8 }
 0x864   : > { %v4435_v22 = vpop.eup %4434 }
 0x865   : > { %4438 = vtanh.f32 %v3340_v21  ;;  %3348 = vst [vmem:[#allocation7] sm:$0xff] %v3340_v21  ;;  %v3337_v24 = vmul.f32 %v4435_v22, %v5403_v19 }
 0x866   : > { %4440 = vrcp.f32 %v3331_v23  ;;  %v4437_v26 = vpop.eup %4436 }
 0x867   : > { %v3341_v25 = vadd.f32 %v3339_v17, %v3337_v24 }
 0x869   : > { %4442 = vtanh.f32 %v3341_v25  ;;  %3349 = vst [vmem:[#allocation7 + $0x8] sm:$0xff] %v3341_v25 }
 0x872   : > { %v4439_v6 = vpop.eup %4438 }
 0x873   : > { %v3344_v28 = vmul.f32 %v4439_v6, %v4437_v26  ;;  %v4441_v29 = vpop.eup %4440 }
 0x875   : > { %3346 = vst [vmem:[#allocation5 + $0x8] sm:$0xff] %v3344_v28  ;;  %3353 = sbr.rel (%p3853_p2) target bundleno = 2403 (0x963), region = 76 }
 0x876   : > { %v4443_v27 = vpop.eup %4442 }
 0x877   : > { %v3345_v30 = vmul.f32 %v4443_v27, %v4441_v29 }
 0x879   : > { %3347 = vst [vmem:[#allocation5] sm:$0xff] %v3345_v30 }
 0x87a   : > { %v4444_v31 = vld [vmem:[%s5475_s7 + $0x38] sm:$0xff]   ;;  %v4570_v19 = vmov 0.0   ;;  %v4445_v32 = vld [vmem:[%s5475_s7 + $0x30] sm:$0xff]   ;;  %vm4571_vm2 = vmmov 0   ;;  %v4446_v34 = vld [vmem:[%s5475_s7 + $0x28] sm:$0xff]   ;;  %v3354_v63 = vpack.c.bf16 %v3345_v30, %v3344_v28 }
 0x87b   : > { %3905 = vmatprep.subr.bf16.mxu0 %v4570_v19  ;;  %3921 = vmatprep.mubr.msk.bf16.mxu0 %vm4571_vm2, %v4570_v19  ;;  %v4447_v35 = vld [vmem:[%s5475_s7 + $0x20] sm:$0xff]   ;;  %v4448_v37 = vld [vmem:[%s5475_s7 + $0x18] sm:$0xff]   ;;  %v4449_v38 = vld [vmem:[%s5475_s7 + $0x10] sm:$0xff]  }
 0x87c   : > { %3906 = vmatpush3.bf16.msra.mxu0 %v4444_v31  ;;  %v4450_v40 = vld [vmem:[%s5475_s7 + $0x8] sm:$0xff]   ;;  %v4451_v41 = vld [vmem:[%s5475_s7] sm:$0xff]  }
 0x87d   : > { %3907 = vmatprep.subr.bf16.mxu0 %v4570_v19  ;;  %v3854_v42 = vld [vmem:[%s5476_s8] ss:$0 sm:$0xff] }
 0x880   : > { %3908 = vmatpush3.bf16.msra.mxu0 %v4445_v32 }
 0x881   : > { %3909 = vmatprep.subr.bf16.mxu0 %v4570_v19 }
 0x884   : > { %3910 = vmatpush3.bf16.msra.mxu0 %v4446_v34 }
 0x885   : > { %3911 = vmatprep.subr.bf16.mxu0 %v4570_v19 }
 0x888   : > { %3912 = vmatpush3.bf16.msra.mxu0 %v4447_v35 }
 0x889   : > { %3913 = vmatprep.subr.bf16.mxu0 %v4570_v19 }
 0x88c   : > { %3914 = vmatpush3.bf16.msra.mxu0 %v4448_v37 }
 0x88d   : > { %3915 = vmatprep.subr.bf16.mxu0 %v4570_v19 }
 0x890   : > { %3916 = vmatpush3.bf16.msra.mxu0 %v4449_v38 }
 0x891   : > { %3917 = vmatprep.subr.bf16.mxu0 %v4570_v19 }
 0x894   : > { %3918 = vmatpush3.bf16.msra.mxu0 %v4450_v40 }
 0x895   : > { %3919 = vmatprep.subr.bf16.mxu0 %v4570_v19 }
 0x898   : > { %3920 = vmatpush3.bf16.msra.mxu0 %v4451_v41 }
 0x89b   : > { %3922 = vmatmul.mubr.bf16.vlgmr.msra.gmra.mxu0 %v3354_v63 }
 0x95b   : > { %v3460_v43 = vpop.f32.mrf.mxu0 }
 0x95c   : > { %v3461_v44 = vadd.f32 %v3854_v42, %v3460_v43 }
 0x95d   : > { %v3923_v46 = vpop.f32.mrf.mxu0 }
 0x95e   : > { %3467 = vst [vmem:[%s5477_s9] sm:$0xff] %v3461_v44 }
 0x95f   : > { %v3463_v47 = vpop.f32.mrf.mxu0 }
 0x960   : > { %v3464_v48 = vadd.f32 %v3854_v42, %v3463_v47 }
 0x961   : > { %v3924_v49 = vpop.f32.mrf.mxu0 }
 0x962   : > { %3468 = vst [vmem:[%s5477_s9 + $0x8] sm:$0xff] %v3464_v48 }
 0x963 PF: > { %s21_s11 = sadd.s32 1, %s4560_s11   ;;  %s5575_s30 = smov %s4556_s10 }
 0x964   : > { %p18_p5 = scmp.ge.s32.totalorder %s21_s11, 4   ;;  %s5576_s10 = smov %s5578_s18 }
 0x966   :  { %20 = sbr.rel (!%p18_p5) target bundleno = 3 (0x3), region = 114 }
 0x96b   :  { %3491 = vsyncpa [#allocation9], 1 }
 0x96c   :  { %3493 = vsyncpa [#allocation9 + $0x1], 1 }
 0x96d   :  { %3494 = vsyncpa [#allocation11], 1 }

</bundles_post_ra>
